<compile_context>
chip_gen: v7x
topology: tpu7x:2x2x1
jax: 0.10.0
libtpu: 0.0.40
codegen_flags: <defaults>
</compile_context>

<pallas_src>
import jax
import jax.numpy as jnp
from jax.experimental import pallas as pl
from jax.experimental.pallas import tpu as pltpu

LN_EPS = 1e-5


def _quantum_attn_kernel(x_ref, w_ref, p_ref, o_ref):
    """One grid step processes `Bt` batch elements.

    x_ref : (Bt, 3, 2L, D)  packed activations; axis1 = [q, k, v],
                            rows within 2L = [real (L) | imag (L)]
    w_ref : (3, D, D)       pre-transposed projection weights (wq.T, wk.T, wv.T)
    p_ref : (5, D)          [bq, bk, bv, ln_gamma, ln_beta]
    o_ref : (Bt, L, 2D)     [LayerNorm(out_real) | LayerNorm(out_imag)]
    """
    Bt, _, twoL, D = x_ref.shape
    L = twoL // 2
    M = Bt * twoL

    x = x_ref[...]                                   # (Bt, 3, 2L, D)
    p = p_ref[...]                                   # (5, D)
    bq, bk, bv = p[0:1], p[1:2], p[2:3]              # (1, D) each
    gamma, beta = p[3:4], p[4:5]

    # ---- fused projections: one MXU matmul per weight for real+imag+batch ----
    q2 = x[:, 0].reshape(M, D)
    k2 = x[:, 1].reshape(M, D)
    v2 = x[:, 2].reshape(M, D)
    qp = jnp.dot(q2, w_ref[0], preferred_element_type=jnp.float32) + bq
    kp = jnp.dot(k2, w_ref[1], preferred_element_type=jnp.float32) + bk
    vp = jnp.dot(v2, w_ref[2], preferred_element_type=jnp.float32) + bv

    # split back into (batch, real/imag, L, D) -- leading-dim relabel only
    qp = qp.reshape(Bt, 2, L, D)
    kp = kp.reshape(Bt, 2, L, D)
    vp = vp.reshape(Bt, 2, L, D)
    qr, qi = qp[:, 0], qp[:, 1]                      # (Bt, L, D)
    kr, ki = kp[:, 0], kp[:, 1]

    # ---- complex score |q * conj(k)|^2 (elementwise, VPU) ----
    ar = qr * kr + qi * ki
    ai = qi * kr - qr * ki
    s = ar * ar + ai * ai                            # (Bt, L, D)

    # ---- softmax over the feature axis ----
    m = jnp.max(s, axis=-1, keepdims=True)
    e = jnp.exp(s - m)
    # approx reciprocal runs on the EUP slot; the trailing LayerNorm cancels a
    # uniform per-row scale exactly, so this is numerically safe here.
    w = e * pl.reciprocal(jnp.sum(e, axis=-1, keepdims=True), approx=True)

    # ---- fused attention output: weights @ [v_real | v_imag] (one matmul) ----
    v_cat = jnp.concatenate([vp[:, 0], vp[:, 1]], axis=-1)   # (Bt, L, 2D), L == D
    out = jnp.einsum('blk,bke->ble', w, v_cat,
                     preferred_element_type=jnp.float32)     # (Bt, L, 2D)

    # ---- LayerNorm per D-wide half (biased variance, eps = 1e-5) ----
    def _ln(y):
        mu = jnp.mean(y, axis=-1, keepdims=True)
        yc = y - mu
        var = jnp.mean(yc * yc, axis=-1, keepdims=True)
        return yc * jax.lax.rsqrt(var + LN_EPS) * gamma + beta

    o_ref[...] = jnp.concatenate([_ln(out[..., :D]), _ln(out[..., D:])], axis=-1)


def _pick_batch_tile(B, L, D):
    """Largest divisor of B whose per-step activation footprint stays modest;
    prefer >=2 grid steps (v7x megacore) when halving still leaves >=128
    stacked matmul rows."""
    budget = 8 * 1024 * 1024          # bytes for double-buffered in+out blocks
    bt = 1
    for cand in range(1, B + 1):
        # in block: 6*L*D f32, out block: 2*L*D f32, double-buffered
        if B % cand == 0 and cand * (8 * L * D) * 4 * 2 <= budget:
            bt = cand
    if B // bt < 2 and bt % 2 == 0 and (bt // 2) * 2 * L >= 128:
        bt //= 2
    return bt


def basic_quantum_attention(q_real, q_imag, k_real, k_imag, v_real, v_imag,
                            wq, bq, wk, bk, wv, bv, gamma, beta,
                            *, batch_tile=None):
    B, L, D = q_real.shape
    assert L == D, "reference semantics (attn_weights @ v) require L == D"
    if batch_tile is None:
        batch_tile = _pick_batch_tile(B, L, D)
    assert B % batch_tile == 0
    nb = B // batch_tile
    f32 = jnp.float32

    # Pack activations: (B, 3, 2L, D); axis1 = [q, k, v]; rows = [real | imag].
    x_all = jnp.stack([
        jnp.concatenate([q_real, q_imag], axis=1),
        jnp.concatenate([k_real, k_imag], axis=1),
        jnp.concatenate([v_real, v_imag], axis=1),
    ], axis=1).astype(f32)

    # Pre-transpose weights once host-side; pack all (D,)-params into one slab.
    w_all = jnp.stack([wq.T, wk.T, wv.T]).astype(f32)          # (3, D, D)
    p_all = jnp.stack([bq, bk, bv, gamma, beta]).astype(f32)   # (5, D)

    cost = pl.CostEstimate(
        flops=16 * B * L * D * D,
        transcendentals=B * L * D,
        bytes_accessed=4 * (8 * B * L * D + 3 * D * D + 5 * D),
    )

    out = pl.pallas_call(
        _quantum_attn_kernel,
        out_shape=jax.ShapeDtypeStruct((B, L, 2 * D), f32),
        grid_spec=pltpu.PrefetchScalarGridSpec(
            num_scalar_prefetch=0,
            grid=(nb,),
            in_specs=[
                pl.BlockSpec((batch_tile, 3, 2 * L, D), lambda i: (i, 0, 0, 0)),
                pl.BlockSpec((3, D, D), lambda i: (0, 0, 0)),
                pl.BlockSpec((5, D), lambda i: (0, 0)),
            ],
            out_specs=pl.BlockSpec((batch_tile, L, 2 * D), lambda i: (i, 0, 0)),
        ),
        compiler_params=pltpu.CompilerParams(
            dimension_semantics=("parallel",)),
        cost_estimate=cost,
    )(x_all, w_all, p_all)

    # Lane-dense output slab [real | imag]; split back in the wrapper.
    return out[..., :D], out[..., D:]


def _reference(q_real, q_imag, k_real, k_imag, v_real, v_imag,
               wq, bq, wk, bk, wv, bv, gamma, beta):
    """Pure-JAX reference mirroring the PyTorch forward."""
    lin = lambda x, w, b: x @ w.T + b
    qr, qi = lin(q_real, wq, bq), lin(q_imag, wq, bq)
    kr, ki = lin(k_real, wk, bk), lin(k_imag, wk, bk)
    vr, vi = lin(v_real, wv, bv), lin(v_imag, wv, bv)
    ar = qr * kr + qi * ki
    ai = qi * kr - qr * ki
    w = jax.nn.softmax(ar ** 2 + ai ** 2, axis=-1)
    out_r = jnp.einsum('bld,bdk->blk', w, vr)
    out_i = jnp.einsum('bld,bdk->blk', w, vi)

    def ln(x):
        mean = x.mean(-1, keepdims=True)
        var = ((x - mean) ** 2).mean(-1, keepdims=True)
        return (x - mean) / jnp.sqrt(var + LN_EPS) * gamma + beta

    return ln(out_r), ln(out_i)


if __name__ == "__main__":
    B = 2
    D = 32          # dim
    L = D           # reference semantics require L == D

    key = jax.random.PRNGKey(0)
    keys = jax.random.split(key, 9)

    # Deterministic parameter init (matches module __init__):
    #   proj weights ~ N(0, 0.02), proj biases zero, LayerNorm gamma=1 beta=0
    wq = 0.02 * jax.random.normal(keys[0], (D, D), jnp.float32)
    wk = 0.02 * jax.random.normal(keys[1], (D, D), jnp.float32)
    wv = 0.02 * jax.random.normal(keys[2], (D, D), jnp.float32)
    bq = jnp.zeros((D,), jnp.float32)
    bk = jnp.zeros((D,), jnp.float32)
    bv = jnp.zeros((D,), jnp.float32)
    gamma = jnp.ones((D,), jnp.float32)
    beta = jnp.zeros((D,), jnp.float32)

    # Inputs: (B, L, D)
    q_real = jax.random.normal(keys[3], (B, L, D), jnp.float32)
    q_imag = jax.random.normal(keys[4], (B, L, D), jnp.float32)
    k_real = jax.random.normal(keys[5], (B, L, D), jnp.float32)
    k_imag = jax.random.normal(keys[6], (B, L, D), jnp.float32)
    v_real = jax.random.normal(keys[7], (B, L, D), jnp.float32)
    v_imag = jax.random.normal(keys[8], (B, L, D), jnp.float32)

    out_r, out_i = basic_quantum_attention(
        q_real, q_imag, k_real, k_imag, v_real, v_imag,
        wq, bq, wk, bk, wv, bv, gamma, beta)
    jax.block_until_ready((out_r, out_i))

    ref_r, ref_i = _reference(
        q_real, q_imag, k_real, k_imag, v_real, v_imag,
        wq, bq, wk, bk, wv, bv, gamma, beta)
    assert jnp.allclose(out_r, ref_r, atol=1e-4, rtol=1e-4)
    assert jnp.allclose(out_i, ref_i, atol=1e-4, rtol=1e-4)

    print("KERNEL_OK")
</pallas_src>

<mosaic_0001>
module attributes {stable_mosaic.version = 11 : i64} {
  func.func @_quantum_attn_kernel(%arg0: i32, %arg1: memref<2x3x64x32xf32, #tpu.memory_space<vmem>>, %arg2: memref<3x32x32xf32, #tpu.memory_space<vmem>>, %arg3: memref<5x32xf32, #tpu.memory_space<vmem>>, %arg4: memref<2x32x64xf32, #tpu.memory_space<vmem>>) attributes {dimension_semantics = [#tpu.dimension_semantics<parallel>], iteration_bounds = array<i64: 1>, scalar_prefetch = 0 : i64, scratch_operands = 0 : i64, tpu.core_type = #tpu.core_type<tc>, window_params = [{transform_indices = @transform_0, window_bounds = array<i64: 2, 3, 64, 32>}, {pipeline_mode = #tpu.pipeline_mode<synchronous>, transform_indices = @transform_1, window_bounds = array<i64: 3, 32, 32>}, {pipeline_mode = #tpu.pipeline_mode<synchronous>, transform_indices = @transform_2, window_bounds = array<i64: 5, 32>}, {transform_indices = @transform_3, window_bounds = array<i64: 2, 32, 64>}]} {
    %c0 = arith.constant 0 : index
    %c0_0 = arith.constant 0 : index
    %c0_1 = arith.constant 0 : index
    %c0_2 = arith.constant 0 : index
    %0 = vector.load %arg1[%c0, %c0_0, %c0_1, %c0_2] : memref<2x3x64x32xf32, #tpu.memory_space<vmem>>, vector<2x3x64x32xf32>
    %c0_3 = arith.constant 0 : index
    %c0_4 = arith.constant 0 : index
    %1 = vector.load %arg3[%c0_3, %c0_4] : memref<5x32xf32, #tpu.memory_space<vmem>>, vector<5x32xf32>
    %2 = vector.extract_strided_slice %1 {offsets = [0, 0], sizes = [1, 32], strides = [1, 1]} : vector<5x32xf32> to vector<1x32xf32>
    %3 = vector.extract_strided_slice %1 {offsets = [1, 0], sizes = [1, 32], strides = [1, 1]} : vector<5x32xf32> to vector<1x32xf32>
    %4 = vector.extract_strided_slice %1 {offsets = [2, 0], sizes = [1, 32], strides = [1, 1]} : vector<5x32xf32> to vector<1x32xf32>
    %5 = vector.extract_strided_slice %1 {offsets = [3, 0], sizes = [1, 32], strides = [1, 1]} : vector<5x32xf32> to vector<1x32xf32>
    %6 = vector.extract_strided_slice %1 {offsets = [4, 0], sizes = [1, 32], strides = [1, 1]} : vector<5x32xf32> to vector<1x32xf32>
    %7 = vector.extract_strided_slice %0 {offsets = [0, 0, 0, 0], sizes = [2, 1, 64, 32], strides = [1, 1, 1, 1]} : vector<2x3x64x32xf32> to vector<2x1x64x32xf32>
    %8 = vector.shape_cast %7 : vector<2x1x64x32xf32> to vector<2x64x32xf32>
    %9 = vector.shape_cast %8 : vector<2x64x32xf32> to vector<128x32xf32>
    %10 = vector.extract_strided_slice %0 {offsets = [0, 1, 0, 0], sizes = [2, 1, 64, 32], strides = [1, 1, 1, 1]} : vector<2x3x64x32xf32> to vector<2x1x64x32xf32>
    %11 = vector.shape_cast %10 : vector<2x1x64x32xf32> to vector<2x64x32xf32>
    %12 = vector.shape_cast %11 : vector<2x64x32xf32> to vector<128x32xf32>
    %13 = vector.extract_strided_slice %0 {offsets = [0, 2, 0, 0], sizes = [2, 1, 64, 32], strides = [1, 1, 1, 1]} : vector<2x3x64x32xf32> to vector<2x1x64x32xf32>
    %14 = vector.shape_cast %13 : vector<2x1x64x32xf32> to vector<2x64x32xf32>
    %15 = vector.shape_cast %14 : vector<2x64x32xf32> to vector<128x32xf32>
    %c0_5 = arith.constant 0 : index
    %c0_6 = arith.constant 0 : index
    %c0_7 = arith.constant 0 : index
    %16 = vector.load %arg2[%c0_5, %c0_6, %c0_7] : memref<3x32x32xf32, #tpu.memory_space<vmem>>, vector<1x32x32xf32>
    %17 = vector.shape_cast %16 : vector<1x32x32xf32> to vector<32x32xf32>
    %cst = arith.constant dense<0.000000e+00> : vector<128x32xf32>
    %18 = tpu.matmul %9, %17, %cst {dimension_numbers = #tpu.dot_dimension_numbers<[1], [0], [0], [1], [0, 0, 1, 1], [], []>} : vector<128x32xf32>, vector<32x32xf32>, vector<128x32xf32> -> vector<128x32xf32>
    %19 = vector.broadcast %2 : vector<1x32xf32> to vector<128x32xf32>
    %20 = arith.addf %18, %19 : vector<128x32xf32>
    %c1 = arith.constant 1 : index
    %c0_8 = arith.constant 0 : index
    %c0_9 = arith.constant 0 : index
    %21 = vector.load %arg2[%c1, %c0_8, %c0_9] : memref<3x32x32xf32, #tpu.memory_space<vmem>>, vector<1x32x32xf32>
    %22 = vector.shape_cast %21 : vector<1x32x32xf32> to vector<32x32xf32>
    %cst_10 = arith.constant dense<0.000000e+00> : vector<128x32xf32>
    %23 = tpu.matmul %12, %22, %cst_10 {dimension_numbers = #tpu.dot_dimension_numbers<[1], [0], [0], [1], [0, 0, 1, 1], [], []>} : vector<128x32xf32>, vector<32x32xf32>, vector<128x32xf32> -> vector<128x32xf32>
    %24 = vector.broadcast %3 : vector<1x32xf32> to vector<128x32xf32>
    %25 = arith.addf %23, %24 : vector<128x32xf32>
    %c2 = arith.constant 2 : index
    %c0_11 = arith.constant 0 : index
    %c0_12 = arith.constant 0 : index
    %26 = vector.load %arg2[%c2, %c0_11, %c0_12] : memref<3x32x32xf32, #tpu.memory_space<vmem>>, vector<1x32x32xf32>
    %27 = vector.shape_cast %26 : vector<1x32x32xf32> to vector<32x32xf32>
    %cst_13 = arith.constant dense<0.000000e+00> : vector<128x32xf32>
    %28 = tpu.matmul %15, %27, %cst_13 {dimension_numbers = #tpu.dot_dimension_numbers<[1], [0], [0], [1], [0, 0, 1, 1], [], []>} : vector<128x32xf32>, vector<32x32xf32>, vector<128x32xf32> -> vector<128x32xf32>
    %29 = vector.broadcast %4 : vector<1x32xf32> to vector<128x32xf32>
    %30 = arith.addf %28, %29 : vector<128x32xf32>
    %31 = vector.shape_cast %20 : vector<128x32xf32> to vector<2x2x32x32xf32>
    %32 = vector.shape_cast %25 : vector<128x32xf32> to vector<2x2x32x32xf32>
    %33 = vector.shape_cast %30 : vector<128x32xf32> to vector<2x2x32x32xf32>
    %34 = vector.extract_strided_slice %31 {offsets = [0, 0, 0, 0], sizes = [2, 1, 32, 32], strides = [1, 1, 1, 1]} : vector<2x2x32x32xf32> to vector<2x1x32x32xf32>
    %35 = vector.shape_cast %34 : vector<2x1x32x32xf32> to vector<2x32x32xf32>
    %36 = vector.extract_strided_slice %31 {offsets = [0, 1, 0, 0], sizes = [2, 1, 32, 32], strides = [1, 1, 1, 1]} : vector<2x2x32x32xf32> to vector<2x1x32x32xf32>
    %37 = vector.shape_cast %36 : vector<2x1x32x32xf32> to vector<2x32x32xf32>
    %38 = vector.extract_strided_slice %32 {offsets = [0, 0, 0, 0], sizes = [2, 1, 32, 32], strides = [1, 1, 1, 1]} : vector<2x2x32x32xf32> to vector<2x1x32x32xf32>
    %39 = vector.shape_cast %38 : vector<2x1x32x32xf32> to vector<2x32x32xf32>
    %40 = vector.extract_strided_slice %32 {offsets = [0, 1, 0, 0], sizes = [2, 1, 32, 32], strides = [1, 1, 1, 1]} : vector<2x2x32x32xf32> to vector<2x1x32x32xf32>
    %41 = vector.shape_cast %40 : vector<2x1x32x32xf32> to vector<2x32x32xf32>
    %42 = arith.mulf %35, %39 : vector<2x32x32xf32>
    %43 = arith.mulf %37, %41 : vector<2x32x32xf32>
    %44 = arith.addf %42, %43 : vector<2x32x32xf32>
    %45 = arith.mulf %37, %39 : vector<2x32x32xf32>
    %46 = arith.mulf %35, %41 : vector<2x32x32xf32>
    %47 = arith.subf %45, %46 : vector<2x32x32xf32>
    %48 = arith.mulf %44, %44 : vector<2x32x32xf32>
    %49 = arith.mulf %47, %47 : vector<2x32x32xf32>
    %50 = arith.addf %48, %49 : vector<2x32x32xf32>
    %cst_14 = arith.constant dense<0xFF800000> : vector<2x32xf32>
    %51 = vector.multi_reduction <maximumf>, %50, %cst_14 [2] : vector<2x32x32xf32> to vector<2x32xf32>
    %52 = vector.shape_cast %51 : vector<2x32xf32> to vector<2x32x1xf32>
    %53 = vector.broadcast %52 : vector<2x32x1xf32> to vector<2x32x32xf32>
    %54 = arith.subf %50, %53 : vector<2x32x32xf32>
    %55 = math.exp %54 : vector<2x32x32xf32>
    %cst_15 = arith.constant dense<0.000000e+00> : vector<2x32xf32>
    %56 = vector.multi_reduction <add>, %55, %cst_15 [2] : vector<2x32x32xf32> to vector<2x32xf32>
    %57 = vector.shape_cast %56 : vector<2x32xf32> to vector<2x32x1xf32>
    %58 = tpu.reciprocal %57 {approx = true} : vector<2x32x1xf32> -> vector<2x32x1xf32>
    %59 = vector.broadcast %58 : vector<2x32x1xf32> to vector<2x32x32xf32>
    %60 = arith.mulf %55, %59 : vector<2x32x32xf32>
    %61 = vector.extract_strided_slice %33 {offsets = [0, 0, 0, 0], sizes = [2, 1, 32, 32], strides = [1, 1, 1, 1]} : vector<2x2x32x32xf32> to vector<2x1x32x32xf32>
    %62 = vector.shape_cast %61 : vector<2x1x32x32xf32> to vector<2x32x32xf32>
    %63 = vector.extract_strided_slice %33 {offsets = [0, 1, 0, 0], sizes = [2, 1, 32, 32], strides = [1, 1, 1, 1]} : vector<2x2x32x32xf32> to vector<2x1x32x32xf32>
    %64 = vector.shape_cast %63 : vector<2x1x32x32xf32> to vector<2x32x32xf32>
    %65 = tpu.concatenate %62, %64 in 2 : vector<2x32x32xf32>, vector<2x32x32xf32> -> vector<2x32x64xf32>
    "tpu.trace_start"() <{level = 10 : i32, message = "blk,bke->ble"}> : () -> ()
    %cst_16 = arith.constant dense<0.000000e+00> : vector<2x32x64xf32>
    %66 = tpu.matmul %60, %65, %cst_16 {dimension_numbers = #tpu.dot_dimension_numbers<[2], [1], [1], [2], [0, 0, 0, 1, 1, 2], [0], [0]>} : vector<2x32x32xf32>, vector<2x32x64xf32>, vector<2x32x64xf32> -> vector<2x32x64xf32>
    "tpu.trace_stop"() : () -> ()
    %67 = vector.extract_strided_slice %66 {offsets = [0, 0, 0], sizes = [2, 32, 32], strides = [1, 1, 1]} : vector<2x32x64xf32> to vector<2x32x32xf32>
    %cst_17 = arith.constant dense<0.000000e+00> : vector<2x32xf32>
    %68 = vector.multi_reduction <add>, %67, %cst_17 [2] : vector<2x32x32xf32> to vector<2x32xf32>
    %69 = vector.shape_cast %68 : vector<2x32xf32> to vector<2x32x1xf32>
    %cst_18 = arith.constant 3.200000e+01 : f32
    %70 = vector.broadcast %cst_18 : f32 to vector<2x32x1xf32>
    %71 = arith.divf %69, %70 : vector<2x32x1xf32>
    %72 = vector.broadcast %71 : vector<2x32x1xf32> to vector<2x32x32xf32>
    %73 = arith.subf %67, %72 : vector<2x32x32xf32>
    %74 = arith.mulf %73, %73 : vector<2x32x32xf32>
    %cst_19 = arith.constant dense<0.000000e+00> : vector<2x32xf32>
    %75 = vector.multi_reduction <add>, %74, %cst_19 [2] : vector<2x32x32xf32> to vector<2x32xf32>
    %76 = vector.shape_cast %75 : vector<2x32xf32> to vector<2x32x1xf32>
    %cst_20 = arith.constant 3.200000e+01 : f32
    %77 = vector.broadcast %cst_20 : f32 to vector<2x32x1xf32>
    %78 = arith.divf %76, %77 : vector<2x32x1xf32>
    %cst_21 = arith.constant 9.99999974E-6 : f32
    %79 = vector.broadcast %cst_21 : f32 to vector<2x32x1xf32>
    %80 = arith.addf %78, %79 : vector<2x32x1xf32>
    %81 = math.rsqrt %80 : vector<2x32x1xf32>
    %82 = vector.broadcast %81 : vector<2x32x1xf32> to vector<2x32x32xf32>
    %83 = arith.mulf %73, %82 : vector<2x32x32xf32>
    %84 = vector.shape_cast %5 : vector<1x32xf32> to vector<1x1x32xf32>
    %85 = vector.broadcast %84 : vector<1x1x32xf32> to vector<2x32x32xf32>
    %86 = arith.mulf %83, %85 : vector<2x32x32xf32>
    %87 = vector.shape_cast %6 : vector<1x32xf32> to vector<1x1x32xf32>
    %88 = vector.broadcast %87 : vector<1x1x32xf32> to vector<2x32x32xf32>
    %89 = arith.addf %86, %88 : vector<2x32x32xf32>
    %90 = vector.extract_strided_slice %66 {offsets = [0, 0, 32], sizes = [2, 32, 32], strides = [1, 1, 1]} : vector<2x32x64xf32> to vector<2x32x32xf32>
    %cst_22 = arith.constant dense<0.000000e+00> : vector<2x32xf32>
    %91 = vector.multi_reduction <add>, %90, %cst_22 [2] : vector<2x32x32xf32> to vector<2x32xf32>
    %92 = vector.shape_cast %91 : vector<2x32xf32> to vector<2x32x1xf32>
    %cst_23 = arith.constant 3.200000e+01 : f32
    %93 = vector.broadcast %cst_23 : f32 to vector<2x32x1xf32>
    %94 = arith.divf %92, %93 : vector<2x32x1xf32>
    %95 = vector.broadcast %94 : vector<2x32x1xf32> to vector<2x32x32xf32>
    %96 = arith.subf %90, %95 : vector<2x32x32xf32>
    %97 = arith.mulf %96, %96 : vector<2x32x32xf32>
    %cst_24 = arith.constant dense<0.000000e+00> : vector<2x32xf32>
    %98 = vector.multi_reduction <add>, %97, %cst_24 [2] : vector<2x32x32xf32> to vector<2x32xf32>
    %99 = vector.shape_cast %98 : vector<2x32xf32> to vector<2x32x1xf32>
    %cst_25 = arith.constant 3.200000e+01 : f32
    %100 = vector.broadcast %cst_25 : f32 to vector<2x32x1xf32>
    %101 = arith.divf %99, %100 : vector<2x32x1xf32>
    %cst_26 = arith.constant 9.99999974E-6 : f32
    %102 = vector.broadcast %cst_26 : f32 to vector<2x32x1xf32>
    %103 = arith.addf %101, %102 : vector<2x32x1xf32>
    %104 = math.rsqrt %103 : vector<2x32x1xf32>
    %105 = vector.broadcast %104 : vector<2x32x1xf32> to vector<2x32x32xf32>
    %106 = arith.mulf %96, %105 : vector<2x32x32xf32>
    %107 = vector.shape_cast %5 : vector<1x32xf32> to vector<1x1x32xf32>
    %108 = vector.broadcast %107 : vector<1x1x32xf32> to vector<2x32x32xf32>
    %109 = arith.mulf %106, %108 : vector<2x32x32xf32>
    %110 = vector.shape_cast %6 : vector<1x32xf32> to vector<1x1x32xf32>
    %111 = vector.broadcast %110 : vector<1x1x32xf32> to vector<2x32x32xf32>
    %112 = arith.addf %109, %111 : vector<2x32x32xf32>
    %113 = tpu.concatenate %89, %112 in 2 : vector<2x32x32xf32>, vector<2x32x32xf32> -> vector<2x32x64xf32>
    %c0_27 = arith.constant 0 : index
    %c0_28 = arith.constant 0 : index
    %c0_29 = arith.constant 0 : index
    %114 = vector.load %arg4[%c0_27, %c0_28, %c0_29] : memref<2x32x64xf32, #tpu.memory_space<vmem>>, vector<2x32x64xf32>
    tpu.vector_store %arg4[%c0_27, %c0_28, %c0_29], %113 {strides = array<i32>} : memref<2x32x64xf32, #tpu.memory_space<vmem>>, vector<2x32x64xf32>,
    return
  }
  func.func @transform_0(%arg0: i32) -> (i32, i32, i32, i32) {
    %c0_i32 = arith.constant 0 : i32
    %c0_i32_0 = arith.constant 0 : i32
    %c0_i32_1 = arith.constant 0 : i32
    %c0_i32_2 = arith.constant 0 : i32
    return %arg0, %c0_i32, %c0_i32_0, %c0_i32_1 : i32, i32, i32, i32
  }
  func.func @transform_1(%arg0: i32) -> (i32, i32, i32) {
    %c0_i32 = arith.constant 0 : i32
    %c0_i32_0 = arith.constant 0 : i32
    %c0_i32_1 = arith.constant 0 : i32
    %c0_i32_2 = arith.constant 0 : i32
    return %c0_i32, %c0_i32_0, %c0_i32_1 : i32, i32, i32
  }
  func.func @transform_2(%arg0: i32) -> (i32, i32) {
    %c0_i32 = arith.constant 0 : i32
    %c0_i32_0 = arith.constant 0 : i32
    %c0_i32_1 = arith.constant 0 : i32
    return %c0_i32, %c0_i32_0 : i32, i32
  }
  func.func @transform_3(%arg0: i32) -> (i32, i32, i32) {
    %c0_i32 = arith.constant 0 : i32
    %c0_i32_0 = arith.constant 0 : i32
    %c0_i32_1 = arith.constant 0 : i32
    return %arg0, %c0_i32, %c0_i32_0 : i32, i32, i32
  }
}

</mosaic_0001>

<bundles_post_ra>
// kernel: tpu_custom_call.1
= control target key start
LH: loop header
LB: loop body
LE: loop exit
PB: predicated region body
PF: predicated region fallthrough
CT: control target
= control target key end

     0   :  { %vm72_vm0 = vcmask 261120   ;;  %s2551_s0 = inlined_call_operand.vmem [shape: f32[2,3,64,32], index: 0, kind: input, shape index: {}]   ;;  %s2552_s1 = inlined_call_operand.vmem [shape: f32[3,32,32], index: 1, kind: input, shape index: {}]   ;;  %s2553_s2 = inlined_call_operand.vmem [shape: f32[5,32], index: 2, kind: input, shape index: {}]   ;;  %s2554_s3 = inlined_call_operand.hbm [shape: f32[2,32,64], index: 3, kind: output, shape index: {}]  }
   0x1   :  { %v64_v0 = vld [vmem:[%s2552_s1] sm:$0xff]  ;;  %v65_v1 = vld [vmem:[%s2552_s1 + $0x8] sm:$0xff]  ;;  %v66_v2 = vld [vmem:[%s2552_s1 + $0x10] sm:$0xff] }
   0x2   :  { %v1682_v3 = vpack.c.bf16 %v65_v1, %v64_v0  ;;  %v67_v4 = vld [vmem:[%s2552_s1 + $0x18] sm:$0xff]  ;;  %v15_v5 = vld [vmem:[%s2551_s0] sm:$0xff]  ;;  %v1435_v9 = vld [vmem:[%s2552_s1 + $0x28] sm:$0xff] }
   0x3   :  { %v43_v6 = vld [vmem:[%s2551_s0 + $0xe0] sm:$0xff]  ;;  %v1686_v7 = vpack.c.bf16 %v67_v4, %v66_v2  ;;  %1566 = vmatprep.mubr.msk.f32.mxu0 %vm72_vm0, %v15_v5  ;;  %v1436_v11 = vld [vmem:[%s2552_s1 + $0x30] sm:$0xff]  ;;  %v1437_v12 = vld [vmem:[%s2552_s1 + $0x38] sm:$0xff] }
   0x4   :  { %1584 = vmatprep.mubr.msk.f32.mxu1 %vm72_vm0, %v43_v6  ;;  %v1434_v8 = vld [vmem:[%s2552_s1 + $0x20] sm:$0xff]  ;;  %1683 = vmatprep.subr.bf16.mxu0 %v1682_v3  ;;  %v16_v13 = vld [vmem:[%s2551_s0 + $0x8] sm:$0xff]  ;;  %v17_v15 = vld [vmem:[%s2551_s0 + $0x10] sm:$0xff]  ;;  %v1694_v16 = vpack.c.bf16 %v1437_v12, %v1436_v11 }
   0x5   :  { %1722 = vmatprep.subr.bf16.mxu1 %v1682_v3  ;;  %1685 = vmatpush3.bf16.msra.mxu0 %v1682_v3  ;;  %v1690_v10 = vpack.c.bf16 %v1435_v9, %v1434_v8  ;;  %v44_v14 = vld [vmem:[%s2551_s0 + $0xe8] sm:$0xff]  ;;  %v45_v17 = vld [vmem:[%s2551_s0 + $0xf0] sm:$0xff]  ;;  %v18_v18 = vld [vmem:[%s2551_s0 + $0x18] sm:$0xff] }
   0x6   :  { %1724 = vmatpush3.bf16.msra.mxu1 %v1682_v3  ;;  %1687 = vmatprep.subr.bf16.mxu0 %v1686_v7  ;;  %v46_v19 = vld [vmem:[%s2551_s0 + $0xf8] sm:$0xff]  ;;  %v19_v20 = vld [vmem:[%s2551_s0 + $0x20] sm:$0xff]  ;;  %v1455_v22 = vld [vmem:[%s2552_s1 + $0x48] sm:$0xff] }
   0x7   :  { %1723 = vmatprep.subr.bf16.mxu1 %v1686_v7  ;;  %v1454_v21 = vld [vmem:[%s2552_s1 + $0x40] sm:$0xff]  ;;  %v1456_v25 = vld [vmem:[%s2552_s1 + $0x50] sm:$0xff]  ;;  %v1457_v26 = vld [vmem:[%s2552_s1 + $0x58] sm:$0xff] }
   0x8   :  { %v23_v23 = vld [vmem:[%s2551_s0 + $0x40] sm:$0xff]  ;;  %v1698_v24 = vpack.c.bf16 %v1455_v22, %v1454_v21 }
   0x9   :  { %1689 = vmatpush3.bf16.msra.mxu0 %v1686_v7 }
   0xa   :  { %1725 = vmatpush3.bf16.msra.mxu1 %v1686_v7 }
   0xb   :  { %1691 = vmatprep.subr.bf16.mxu1 %v1690_v10 }
   0xc   :  { %1567 = vmatmul.mubr.msk.f32.vlgmr.msra.gmra.mrb[0].mxu0 %vm72_vm0, %v16_v13 }
   0xd   :  { %1585 = vmatmul.mubr.msk.f32.vlgmr.msra.gmra.mrb[0].mxu1 %vm72_vm0, %v44_v14  ;;  %1569 = vmatprep.mubr.msk.f32.mxu0 %vm72_vm0, %v17_v15 }
   0xe   :  { %1693 = vmatpush3.bf16.msra.mxu1 %v1690_v10  ;;  %1587 = vmatprep.mubr.msk.f32.mxu1 %vm72_vm0, %v45_v17 }
   0xf   :  { %1695 = vmatprep.subr.bf16.mxu1 %v1694_v16 }
  0x10   :  { %1570 = vmatmul.mubr.msk.f32.gmra.mrb[2].mxu0 %vm72_vm0, %v18_v18 }
  0x11   :  { %1588 = vmatmul.mubr.msk.f32.gmra.mrb[2].mxu1 %vm72_vm0, %v46_v19 }
  0x12   :  { %8 = vsyncpa [#allocation3], 0  ;;  %1697 = vmatpush3.bf16.msra.mxu1 %v1694_v16  ;;  %1572 = vmatprep.mubr.msk.f32.mxu0 %vm72_vm0, %v19_v20  ;;  %v20_v27 = vld [vmem:[%s2551_s0 + $0x28] sm:$0xff]  ;;  %v21_v29 = vld [vmem:[%s2551_s0 + $0x30] sm:$0xff]  ;;  %v1702_v31 = vpack.c.bf16 %v1457_v26, %v1456_v25  ;;  %v68_v2 = vlaneseq  ;;  %vm1393_vm1 = vcmask 523264   ;;  %s1841_s23 = smov [#allocation2]  }
  0x13   :  { %v24_v28 = vld [vmem:[%s2551_s0 + $0x48] sm:$0xff]  ;;  %1598 = vmatprep.mubr.msk.f32.mxu1 %vm72_vm0, %v23_v23  ;;  %v25_v30 = vld [vmem:[%s2551_s0 + $0x50] sm:$0xff]  ;;  %1699 = vmatprep.subr.bf16.mxu0 %v1698_v24  ;;  %v22_v32 = vld [vmem:[%s2551_s0 + $0x38] sm:$0xff]  ;;  %s1407_s24 = sshll.u32 %s1841_s23, 4  ;;  %s1408_s24 = int_to_ptr.vmem [resolvable:$true] %s1407_s24 }
  0x14   :  { %1701 = vmatpush3.bf16.msra.mxu0 %v1698_v24  ;;  %v26_v33 = vld [vmem:[%s2551_s0 + $0x58] sm:$0xff]  ;;  %v27_v34 = vld [vmem:[%s2551_s0 + $0x60] sm:$0xff]  ;;  %v28_v36 = vld [vmem:[%s2551_s0 + $0x68] sm:$0xff]  ;;  %v2092_v3 = vshrl.u32 %v68_v2, 7  ;;  %s1815_s25 = scalar_lea.vmem %s1408_s24, 1024  ;;  %p1820_p1 = scmp.lt.s32.totalorder %s1408_s24, %s1408_s24 }
  0x15   :  { %1573 = vmatmul.mubr.msk.f32.gmra.mrb[4].mxu0 %vm72_vm0, %v20_v27  ;;  %1599 = vmatmul.mubr.msk.f32.vlgmr.msra.gmra.mrb[4].mxu1 %vm72_vm0, %v24_v28  ;;  %v39_v35 = vld [vmem:[%s2551_s0 + $0xc0] sm:$0xff]  ;;  %v40_v37 = vld [vmem:[%s2551_s0 + $0xc8] sm:$0xff]  ;;  %v29_v38 = vld [vmem:[%s2551_s0 + $0x70] sm:$0xff]  ;;  %p1816_p0 = scmp.ne.s32.totalorder %s1408_s24, %s1815_s25  ;;  %p1821_p2 = scmp.lt.s32.totalorder %s1815_s25, %s1815_s25 }
  0x16   :  { %1575 = vmatprep.mubr.msk.f32.mxu0 %vm72_vm0, %v21_v29  ;;  %1601 = vmatprep.mubr.msk.f32.mxu1 %vm72_vm0, %v25_v30  ;;  %v41_v39 = vld [vmem:[%s2551_s0 + $0xd0] sm:$0xff]  ;;  %v30_v40 = vld [vmem:[%s2551_s0 + $0x78] sm:$0xff]  ;;  %v47_v42 = vld [vmem:[%s2551_s0 + $0x100] sm:$0xff]  ;;  %v70_v6 = vsub.s32 0, %v2092_v3  ;;  %v273_v9 = vsub.s32 1, %v2092_v3 }
  0x17   :  { %1703 = vmatprep.subr.bf16.mxu0 %v1702_v31  ;;  %v42_v41 = vld [vmem:[%s2551_s0 + $0xd8] sm:$0xff]  ;;  %v31_v43 = vld [vmem:[%s2551_s0 + $0x80] sm:$0xff]  ;;  %v48_v44 = vld [vmem:[%s2551_s0 + $0x108] sm:$0xff]  ;;  %p1822_p3 = por %p1821_p2, %p1820_p1 }
  0x18   :  { %1705 = vmatpush3.bf16.msra.mxu0 %v1702_v31  ;;  %v49_v45 = vld [vmem:[%s2551_s0 + $0x110] sm:$0xff]  ;;  %v50_v46 = vld [vmem:[%s2551_s0 + $0x118] sm:$0xff]  ;;  %v51_v47 = vld [vmem:[%s2551_s0 + $0x120] sm:$0xff] }
  0x19   :  { %1576 = vmatmul.mubr.msk.f32.gmra.mrb[6].mxu0 %vm72_vm0, %v22_v32  ;;  %1602 = vmatmul.mubr.msk.f32.gmra.mrb[6].mxu1 %vm72_vm0, %v26_v33  ;;  %v52_v48 = vld [vmem:[%s2551_s0 + $0x128] sm:$0xff]  ;;  %v53_v49 = vld [vmem:[%s2551_s0 + $0x130] sm:$0xff]  ;;  %v54_v50 = vld [vmem:[%s2551_s0 + $0x138] sm:$0xff]  ;;  %p1823_p4 = pnand %p1822_p3, %p1816_p0 }
  0x1a   :  { %1604 = vmatprep.mubr.msk.f32.mxu1 %vm72_vm0, %v27_v34  ;;  %1578 = vmatprep.mubr.msk.f32.mxu0 %vm72_vm0, %v39_v35  ;;  %v32_v51 = vld [vmem:[%s2551_s0 + $0x88] sm:$0xff]  ;;  %v33_v52 = vld [vmem:[%s2551_s0 + $0x90] sm:$0xff]  ;;  %v34_v53 = vld [vmem:[%s2551_s0 + $0x98] sm:$0xff] }
  0x1b   :  { %v35_v54 = vld [vmem:[%s2551_s0 + $0xa0] sm:$0xff]  ;;  %v36_v55 = vld [vmem:[%s2551_s0 + $0xa8] sm:$0xff]  ;;  %v37_v56 = vld [vmem:[%s2551_s0 + $0xb0] sm:$0xff] }
  0x1c   :  { %v38_v57 = vld [vmem:[%s2551_s0 + $0xb8] sm:$0xff]  ;;  %v55_v58 = vld [vmem:[%s2551_s0 + $0x140] sm:$0xff]  ;;  %v56_v59 = vld [vmem:[%s2551_s0 + $0x148] sm:$0xff] }
  0x1d   :  { %1605 = vmatmul.mubr.msk.f32.gmra.mrb[8].mxu1 %vm72_vm0, %v28_v36  ;;  %1579 = vmatmul.mubr.msk.f32.gmra.mrb[8].mxu0 %vm72_vm0, %v40_v37  ;;  %v57_v60 = vld [vmem:[%s2551_s0 + $0x150] sm:$0xff]  ;;  %v58_v61 = vld [vmem:[%s2551_s0 + $0x158] sm:$0xff]  ;;  %v59_v62 = vld [vmem:[%s2551_s0 + $0x160] sm:$0xff] }
  0x1e   :  { %1607 = vmatprep.mubr.msk.f32.mxu1 %vm72_vm0, %v29_v38  ;;  %1581 = vmatprep.mubr.msk.f32.mxu0 %vm72_vm0, %v41_v39  ;;  %v60_v63 = vld [vmem:[%s2551_s0 + $0x168] sm:$0xff]  ;;  %v61_v0 = vld [vmem:[%s2551_s0 + $0x170] sm:$0xff]  ;;  %v62_v1 = vld [vmem:[%s2551_s0 + $0x178] sm:$0xff]  ;;  %s1839_s0 = smov 32  }
  0x1f   :  { %v2099_v10 = vld [vmem:[%s2553_s2] sm:$0x1f]  ;;  %s1840_s2 = smov 96  }
  0x20   :  { %v2104_v13 = vrot.slane %v2099_v10, %v70_v6  ;;  %v2109_v16 = vrot.slane %v2099_v10, %v273_v9 }
  0x21   :  { %1608 = vmatmul.mubr.msk.f32.gmra.mrb[10].mxu1 %vm72_vm0, %v30_v40  ;;  %1582 = vmatmul.mubr.msk.f32.gmra.mrb[10].mxu0 %vm72_vm0, %v42_v41 }
  0x22   :  { %1610 = vmatprep.mubr.msk.f32.mxu1 %vm72_vm0, %v47_v42  ;;  %1630 = vmatprep.mubr.msk.f32.mxu0 %vm72_vm0, %v31_v43 }
  0x25   :  { %1611 = vmatmul.mubr.msk.f32.gmra.mrb[12].mxu1 %vm72_vm0, %v48_v44  ;;  %1631 = vmatmul.mubr.msk.f32.vlgmr.msra.gmra.mrb[12].mxu0 %vm72_vm0, %v32_v51 }
  0x26   :  { %1613 = vmatprep.mubr.msk.f32.mxu1 %vm72_vm0, %v49_v45  ;;  %1633 = vmatprep.mubr.msk.f32.mxu0 %vm72_vm0, %v33_v52 }
  0x29   :  { %1614 = vmatmul.mubr.msk.f32.gmra.mrb[14].mxu1 %vm72_vm0, %v50_v46  ;;  %1634 = vmatmul.mubr.msk.f32.gmra.mrb[14].mxu0 %vm72_vm0, %v34_v53 }
  0x2a   :  { %1616 = vmatprep.mubr.msk.f32.mxu1 %vm72_vm0, %v51_v47  ;;  %1636 = vmatprep.mubr.msk.f32.mxu0 %vm72_vm0, %v35_v54 }
  0x2d   :  { %1617 = vmatmul.mubr.msk.f32.gmra.mrb[16].mxu1 %vm72_vm0, %v52_v48  ;;  %1637 = vmatmul.mubr.msk.f32.gmra.mrb[16].mxu0 %vm72_vm0, %v36_v55 }
  0x2e   :  { %1619 = vmatprep.mubr.msk.f32.mxu1 %vm72_vm0, %v53_v49  ;;  %1639 = vmatprep.mubr.msk.f32.mxu0 %vm72_vm0, %v37_v56 }
  0x31   :  { %1620 = vmatmul.mubr.msk.f32.gmra.mrb[18].mxu1 %vm72_vm0, %v54_v50  ;;  %1640 = vmatmul.mubr.msk.f32.gmra.mrb[18].mxu0 %vm72_vm0, %v38_v57 }
  0x32   :  { %1642 = vmatprep.mubr.msk.f32.mxu0 %vm72_vm0, %v55_v58 }
  0x35   :  { %1643 = vmatmul.mubr.msk.f32.gmra.mrb[20].mxu0 %vm72_vm0, %v56_v59 }
  0x36   :  { %1645 = vmatprep.mubr.msk.f32.mxu0 %vm72_vm0, %v57_v60 }
  0x39   :  { %1646 = vmatmul.mubr.msk.f32.gmra.mrb[22].mxu0 %vm72_vm0, %v58_v61 }
  0x3a   :  { %1648 = vmatprep.mubr.msk.f32.mxu0 %vm72_vm0, %v59_v62 }
  0x3d   :  { %1649 = vmatmul.mubr.msk.f32.gmra.mrb[24].mxu0 %vm72_vm0, %v60_v63 }
  0x3e   :  { %1651 = vmatprep.mubr.msk.f32.mxu0 %vm72_vm0, %v61_v0 }
  0x41   :  { %1652 = vmatmul.mubr.msk.f32.gmra.mrb[26].mxu0 %vm72_vm0, %v62_v1 }
  0xdf   :  { %v1568_v5 = vpop.f32.mrb[0].mxu0 }
  0xe0   :  { %v1586_v4 = vpop.f32.mrb[0].mxu1  ;;  %v187_v8 = vpop.f32.mrb[1].mxu0  ;;  %v193_v17 = vadd.f32 %v1568_v5, %v2104_v13 }
  0xe1   :  { %v247_v7 = vpop.f32.mrb[1].mxu1  ;;  %v188_v18 = vadd.f32 %v187_v8, %v2104_v13  ;;  %v2126_v51 = vadd.f32 %v1586_v4, %v2104_v13 }
  0xe2   :  { %v2129_v54 = vadd.f32 %v247_v7, %v2104_v13 }
  0xe3   :  { %v1571_v12 = vpop.f32.mrb[2].mxu0 }
  0xe4   :  { %v2101_v11 = vpop.f32.mrb[2].mxu1  ;;  %v197_v15 = vpop.f32.mrb[3].mxu0  ;;  %v203_v27 = vadd.f32 %v1571_v12, %v2104_v13 }
  0xe5   :  { %v2106_v14 = vpop.f32.mrb[3].mxu1  ;;  %v198_v30 = vadd.f32 %v197_v15, %v2104_v13 }
  0xe8   :  { %v1574_v19 = vpop.f32.mrb[4].mxu0  ;;  %v1600_v20 = vpop.f32.mrb[4].mxu1 }
  0xe9   :  { %v213_v21 = vadd.f32 %v1574_v19, %v2104_v13  ;;  %v395_v22 = vadd.f32 %v1600_v20, %v2109_v16  ;;  %v207_v23 = vpop.f32.mrb[5].mxu0  ;;  %v389_v24 = vpop.f32.mrb[5].mxu1 }
  0xea   :  { %v208_v25 = vadd.f32 %v207_v23, %v2104_v13  ;;  %v390_v26 = vadd.f32 %v389_v24, %v2109_v16 }
  0xeb   :  { %v671_v28 = vmul.f32 %v395_v22, %v193_v17  ;;  %v695_v29 = vmul.f32 %v395_v22, %v213_v21 }
  0xec   :  { %v670_v31 = vmul.f32 %v390_v26, %v188_v18  ;;  %v694_v32 = vmul.f32 %v390_v26, %v208_v25  ;;  %v1577_v33 = vpop.f32.mrb[6].mxu0  ;;  %v1603_v34 = vpop.f32.mrb[6].mxu1 }
  0xed   :  { %v223_v35 = vadd.f32 %v1577_v33, %v2104_v13  ;;  %v405_v36 = vadd.f32 %v1603_v34, %v2109_v16  ;;  %v217_v37 = vpop.f32.mrb[7].mxu0  ;;  %v399_v38 = vpop.f32.mrb[7].mxu1 }
  0xee   :  { %v218_v39 = vadd.f32 %v217_v37, %v2104_v13  ;;  %v400_v40 = vadd.f32 %v399_v38, %v2109_v16 }
  0xef   :  { %v673_v41 = vmul.f32 %v405_v36, %v203_v27  ;;  %v697_v42 = vmul.f32 %v405_v36, %v223_v35 }
  0xf0   :  { %v672_v43 = vmul.f32 %v400_v40, %v198_v30  ;;  %v696_v44 = vmul.f32 %v400_v40, %v218_v39  ;;  %v1606_v45 = vpop.f32.mrb[8].mxu1  ;;  %v1580_v46 = vpop.f32.mrb[8].mxu0 }
  0xf1   :  { %v415_v47 = vadd.f32 %v1606_v45, %v2109_v16  ;;  %v409_v48 = vpop.f32.mrb[9].mxu1  ;;  %v227_v49 = vpop.f32.mrb[9].mxu0  ;;  %v233_v58 = vadd.f32 %v1580_v46, %v2104_v13 }
  0xf2   :  { %v410_v50 = vadd.f32 %v409_v48, %v2109_v16  ;;  %v228_v0 = vadd.f32 %v227_v49, %v2104_v13 }
  0xf3   :  { %v679_v52 = vmul.f32 %v415_v47, %v213_v21  ;;  %v703_v53 = vmul.f32 %v415_v47, %v193_v17 }
  0xf4   :  { %v678_v55 = vmul.f32 %v410_v50, %v208_v25  ;;  %v702_v56 = vmul.f32 %v410_v50, %v188_v18  ;;  %v1609_v57 = vpop.f32.mrb[10].mxu1  ;;  %v1583_v59 = vpop.f32.mrb[10].mxu0 }
  0xf5   :  { %v687_v60 = vadd.f32 %v679_v52, %v671_v28  ;;  %v711_v61 = vsub.f32 %v695_v29, %v703_v53  ;;  %v425_v62 = vadd.f32 %v1609_v57, %v2109_v16  ;;  %v419_v63 = vpop.f32.mrb[11].mxu1  ;;  %v237_v1 = vpop.f32.mrb[11].mxu0  ;;  %v2136_v4 = vadd.f32 %v1583_v59, %v2104_v13 }
  0xf6   :  { %v420_v2 = vadd.f32 %v419_v63, %v2109_v16  ;;  %v686_v5 = vadd.f32 %v678_v55, %v670_v31  ;;  %v710_v6 = vsub.f32 %v694_v32, %v702_v56 }
  0xf7   :  { %v681_v7 = vmul.f32 %v425_v62, %v223_v35  ;;  %v705_v8 = vmul.f32 %v425_v62, %v203_v27  ;;  %v719_v9 = vmul.f32 %v687_v60, %v687_v60  ;;  %v727_v12 = vmul.f32 %v711_v61, %v711_v61 }
  0xf8   :  { %v680_v15 = vmul.f32 %v420_v2, %v218_v39  ;;  %v704_v17 = vmul.f32 %v420_v2, %v198_v30  ;;  %v1612_v18 = vpop.f32.mrb[12].mxu1  ;;  %v718_v19 = vmul.f32 %v686_v5, %v686_v5  ;;  %v726_v20 = vmul.f32 %v710_v6, %v710_v6 }
  0xf9   :  { %v689_v21 = vadd.f32 %v681_v7, %v673_v41  ;;  %v713_v22 = vsub.f32 %v697_v42, %v705_v8  ;;  %v435_v23 = vadd.f32 %v1612_v18, %v2109_v16  ;;  %v429_v24 = vpop.f32.mrb[13].mxu1  ;;  %v2139_v25 = vadd.f32 %v727_v12, %v719_v9 }
  0xfa   :  { %v430_v26 = vadd.f32 %v429_v24, %v2109_v16  ;;  %v2142_v28 = vadd.f32 %v726_v20, %v718_v19  ;;  %v688_v29 = vadd.f32 %v680_v15, %v672_v43  ;;  %v712_v27 = vsub.f32 %v696_v44, %v704_v17 }
  0xfb   :  { %v675_v31 = vmul.f32 %v435_v23, %v233_v58  ;;  %v699_v32 = vmul.f32 %v435_v23, %v2126_v51  ;;  %v238_v30 = vadd.f32 %v237_v1, %v2104_v13  ;;  %v721_v33 = vmul.f32 %v689_v21, %v689_v21 }
  0xfc   :  { %v674_v34 = vmul.f32 %v430_v26, %v228_v0  ;;  %v698_v35 = vmul.f32 %v430_v26, %v2129_v54  ;;  %v1615_v36 = vpop.f32.mrb[14].mxu1  ;;  %v742_v37 = vsel %vm72_vm0, %v2142_v28, -inf  ;;  %v720_v38 = vmul.f32 %v688_v29, %v688_v29 }
  0xfd   :  { %v263_v39 = vadd.f32 %v2101_v11, %v2104_v13  ;;  %v445_v40 = vadd.f32 %v1615_v36, %v2109_v16  ;;  %v439_v41 = vpop.f32.mrb[15].mxu1  ;;  %743 = vmax.xlane.f32.xlu0 %v742_v37  ;;  %v728_v42 = vmul.f32 %v712_v27, %v712_v27  ;;  %v729_v43 = vmul.f32 %v713_v22, %v713_v22  ;;  %v1632_v37 = vpop.f32.mrb[12].mxu0 }
  0xfe   :  { %v258_v44 = vadd.f32 %v2106_v14, %v2104_v13  ;;  %v440_v45 = vadd.f32 %v439_v41, %v2109_v16  ;;  %v745_v53 = vsel %vm72_vm0, %v2139_v25, -inf }
  0xff   :  { %v677_v46 = vmul.f32 %v445_v40, %v2136_v4  ;;  %v701_v47 = vmul.f32 %v445_v40, %v263_v39  ;;  %v2156_v48 = vadd.f32 %v728_v42, %v720_v38  ;;  %v2158_v49 = vadd.f32 %v729_v43, %v721_v33 }
 0x100   :  { %v676_v50 = vmul.f32 %v440_v45, %v238_v30  ;;  %v700_v11 = vmul.f32 %v440_v45, %v258_v44  ;;  %v1618_v52 = vpop.f32.mrb[16].mxu1 }
 0x101   :  { %v455_v55 = vadd.f32 %v1618_v52, %v2109_v16  ;;  %v449_v56 = vpop.f32.mrb[17].mxu1  ;;  %v748_v13 = vsel %vm72_vm0, %v2156_v48, -inf  ;;  %746 = vmax.xlane.f32.xlu0 %v745_v53  ;;  %v751_v6 = vsel %vm72_vm0, %v2158_v49, -inf }
 0x102   :  { %v450_v14 = vadd.f32 %v449_v56, %v2109_v16  ;;  %749 = vmax.xlane.f32.xlu1 %v748_v13 }
 0x103   :  { %v683_v57 = vmul.f32 %v455_v55, %v2126_v51  ;;  %v707_v59 = vmul.f32 %v455_v55, %v233_v58 }
 0x104   :  { %v682_v60 = vmul.f32 %v450_v14, %v2129_v54  ;;  %v706_v61 = vmul.f32 %v450_v14, %v228_v0  ;;  %v1621_v62 = vpop.f32.mrb[18].mxu1 }
 0x105   :  { %v691_v63 = vadd.f32 %v683_v57, %v675_v31  ;;  %v715_v1 = vsub.f32 %v699_v32, %v707_v59  ;;  %v465_v2 = vadd.f32 %v1621_v62, %v2109_v16  ;;  %v459_v5 = vpop.f32.mrb[19].mxu1 }
 0x106   :  { %v690_v7 = vadd.f32 %v682_v60, %v674_v34  ;;  %v714_v8 = vsub.f32 %v698_v35, %v706_v61  ;;  %v460_v9 = vadd.f32 %v459_v5, %v2109_v16  ;;  %752 = vmax.xlane.f32.xlu1 %v751_v6  ;;  %v475_v35 = vsub.s32 2, %v2092_v3 }
 0x107   :  { %v685_v12 = vmul.f32 %v465_v2, %v263_v39  ;;  %v709_v51 = vmul.f32 %v465_v2, %v2136_v4  ;;  %v723_v58 = vmul.f32 %v691_v63, %v691_v63  ;;  %v731_v54 = vmul.f32 %v715_v1, %v715_v1  ;;  %v591_v39 = vpop.f32.mrb[13].mxu0 }
 0x108   :  { %v684_v0 = vmul.f32 %v460_v9, %v258_v44  ;;  %v708_v15 = vmul.f32 %v460_v9, %v238_v30  ;;  %v722_v17 = vmul.f32 %v690_v7, %v690_v7  ;;  %v730_v18 = vmul.f32 %v714_v8, %v714_v8  ;;  %v1635_v41 = vpop.f32.mrb[14].mxu0 }
 0x109   :  { %v693_v19 = vadd.f32 %v685_v12, %v677_v46  ;;  %v717_v20 = vsub.f32 %v701_v47, %v709_v51  ;;  %v2173_v21 = vadd.f32 %v731_v54, %v723_v58  ;;  %v476_v36 = vrot.slane %v2099_v10, %v475_v35  ;;  %v601_v43 = vpop.f32.mrb[15].mxu0 }
 0x10a   :  { %v692_v22 = vadd.f32 %v684_v0, %v676_v50  ;;  %v716_v23 = vsub.f32 %v700_v11, %v708_v15  ;;  %v2175_v24 = vadd.f32 %v730_v18, %v722_v17  ;;  %v1638_v45 = vpop.f32.mrb[16].mxu0 }
 0x10b   :  { %v757_v16 = vsel %vm72_vm0, %v2173_v21, -inf  ;;  %v725_v26 = vmul.f32 %v693_v19, %v693_v19  ;;  %v733_v29 = vmul.f32 %v717_v20, %v717_v20  ;;  %v2191_v38 = vadd.f32 %v1632_v37, %v476_v36  ;;  %v611_v47 = vpop.f32.mrb[17].mxu0 }
 0x10c   :  { %758 = vmax.xlane.f32.xlu1 %v757_v16  ;;  %v754_v4 = vsel %vm72_vm0, %v2175_v24, -inf  ;;  %v724_v27 = vmul.f32 %v692_v22, %v692_v22  ;;  %v732_v31 = vmul.f32 %v716_v23, %v716_v23  ;;  %v2193_v40 = vadd.f32 %v591_v39, %v476_v36  ;;  %v1641_v52 = vpop.f32.mrb[18].mxu0 }
 0x10d   :  { %755 = vmax.xlane.f32.xlu0 %v754_v4  ;;  %v2181_v32 = vadd.f32 %v733_v29, %v725_v26  ;;  %v2195_v42 = vadd.f32 %v1635_v41, %v476_v36  ;;  %v2197_v44 = vadd.f32 %v601_v43, %v476_v36  ;;  %v2199_v46 = vadd.f32 %v1638_v45, %v476_v36  ;;  %v621_v55 = vpop.f32.mrb[19].mxu0 }
 0x10e   :  { %v2183_v30 = vadd.f32 %v732_v31, %v724_v27  ;;  %v2201_v50 = vadd.f32 %v611_v47, %v476_v36  ;;  %v2205_v53 = vadd.f32 %v1641_v52, %v476_v36  ;;  %v2207_v56 = vadd.f32 %v621_v55, %v476_v36  ;;  %v1644_v14 = vpop.f32.mrb[20].mxu0 }
 0x10f   :  { %v763_v33 = vsel %vm72_vm0, %v2181_v32, -inf  ;;  %v2211_v57 = vadd.f32 %v1644_v14, %v476_v36  ;;  %v631_v59 = vpop.f32.mrb[21].mxu0 }
 0x110   :  { %764 = vmax.xlane.f32.xlu1 %v763_v33  ;;  %v760_v34 = vsel %vm72_vm0, %v2183_v30, -inf  ;;  %v1731_v11 = vpack.i.bf16 %v2199_v46, %v2201_v50  ;;  %v1736_v13 = vpack.i.bf16 %v2205_v53, %v2207_v56  ;;  %v2213_v60 = vadd.f32 %v631_v59, %v476_v36  ;;  %v1647_v61 = vpop.f32.mrb[22].mxu0 }
 0x111   :  { %761 = vmax.xlane.f32.xlu0 %v760_v34  ;;  %v2215_v62 = vadd.f32 %v1647_v61, %v476_v36  ;;  %v641_v63 = vpop.f32.mrb[23].mxu0 }
 0x112   :  { %v2217_v1 = vadd.f32 %v641_v63, %v476_v36  ;;  %v1650_v2 = vpop.f32.mrb[24].mxu0 }
 0x113   :  { %v2219_v5 = vadd.f32 %v1650_v2, %v476_v36  ;;  %v651_v6 = vpop.f32.mrb[25].mxu0 }
 0x114   :  { %v2221_v7 = vadd.f32 %v651_v6, %v476_v36  ;;  %v1653_v9 = vpop.f32.mrb[26].mxu0 }
 0x115   :  { %v2225_v12 = vadd.f32 %v1653_v9, %v476_v36  ;;  %v661_v51 = vpop.f32.mrb[27].mxu0 }
 0x116   :  { %v1741_v8 = vpack.i.bf16 %v2219_v5, %v2221_v7  ;;  %v662_v58 = vadd.f32 %v661_v51, %v476_v36 }
 0x118   :  { %v1746_v54 = vpack.i.bf16 %v2225_v12, %v662_v58 }
 0x18a   :  { %v744_v0 = vpop.xlane.xlu0 %743 }
 0x18b   :  { %v766_v15 = vsub.f32 %v2142_v28, %v744_v0 }
 0x18d   :  { %v774_v17 = vmul.f32 1.442695, %v766_v15 }
 0x18e   :  { %v747_v18 = vpop.xlane.xlu0 %746 }
 0x18f   :  { %1751 = vpow2.f32 %v774_v17  ;;  %v750_v19 = vpop.xlane.xlu1 %749  ;;  %v767_v20 = vsub.f32 %v2139_v25, %v747_v18 }
 0x190   :  { %v768_v22 = vsub.f32 %v2156_v48, %v750_v19 }
 0x191   :  { %v776_v23 = vmul.f32 1.442695, %v767_v20 }
 0x192   :  { %v778_v16 = vmul.f32 1.442695, %v768_v22 }
 0x193   :  { %1753 = vpow2.f32 %v776_v23  ;;  %v753_v26 = vpop.xlane.xlu1 %752 }
 0x194   :  { %1755 = vpow2.f32 %v778_v16  ;;  %v769_v29 = vsub.f32 %v2158_v49, %v753_v26 }
 0x196   :  { %v780_v4 = vmul.f32 1.442695, %v769_v29 }
 0x198   :  { %1757 = vpow2.f32 %v780_v4 }
 0x199   :  { %v1752_v27 = vpop.eup %1751  ;;  %v759_v31 = vpop.xlane.xlu1 %758 }
 0x19a   :  { %v771_v28 = vsub.f32 %v2173_v21, %v759_v31  ;;  %v756_v33 = vpop.xlane.xlu0 %755  ;;  %v790_v34 = vsel %vm72_vm0, %v1752_v27, 0.0 }
 0x19b   :  { %v770_v25 = vsub.f32 %v2175_v24, %v756_v33  ;;  %791 = vadd.xlane.f32.xlu0 %v790_v34 }
 0x19c   :  { %v784_v48 = vmul.f32 1.442695, %v771_v28 }
 0x19d   :  { %v2235_v35 = vpop.eup %1753  ;;  %v782_v36 = vmul.f32 1.442695, %v770_v25  ;;  %v765_v37 = vpop.xlane.xlu1 %764 }
 0x19e   :  { %v2237_v39 = vpop.eup %1755  ;;  %1759 = vpow2.f32 %v784_v48  ;;  %v773_v49 = vsub.f32 %v2181_v32, %v765_v37  ;;  %v762_v41 = vpop.xlane.xlu0 %761  ;;  %v793_v21 = vsel %vm72_vm0, %v2235_v35, 0.0 }
 0x19f   :  { %1761 = vpow2.f32 %v782_v36  ;;  %v772_v43 = vsub.f32 %v2183_v30, %v762_v41  ;;  %v796_v24 = vsel %vm72_vm0, %v2237_v39, 0.0  ;;  %794 = vadd.xlane.f32.xlu1 %v793_v21 }
 0x1a0   :  { %v788_v45 = vmul.f32 1.442695, %v773_v49  ;;  %797 = vadd.xlane.f32.xlu0 %v796_v24 }
 0x1a1   :  { %v786_v47 = vmul.f32 1.442695, %v772_v43 }
 0x1a2   :  { %v2245_v52 = vpop.eup %1757  ;;  %1763 = vpow2.f32 %v788_v45 }
 0x1a3   :  { %1765 = vpow2.f32 %v786_v47  ;;  %v799_v32 = vsel %vm72_vm0, %v2245_v52, 0.0 }
 0x1a4   :  { %800 = vadd.xlane.f32.xlu1 %v799_v32 }
 0x1a8   :  { %v2249_v55 = vpop.eup %1759 }
 0x1a9   :  { %v2251_v14 = vpop.eup %1761  ;;  %v805_v30 = vsel %vm72_vm0, %v2249_v55, 0.0 }
 0x1aa   :  { %806 = vadd.xlane.f32.xlu1 %v805_v30  ;;  %v802_v59 = vsel %vm72_vm0, %v2251_v14, 0.0 }
 0x1ab   :  { %803 = vadd.xlane.f32.xlu0 %v802_v59 }
 0x1ac   :  { %v2257_v61 = vpop.eup %1763 }
 0x1ad   :  { %v2259_v63 = vpop.eup %1765  ;;  %v811_v2 = vsel %vm72_vm0, %v2257_v61, 0.0 }
 0x1ae   :  { %812 = vadd.xlane.f32.xlu1 %v811_v2  ;;  %v808_v6 = vsel %vm72_vm0, %v2259_v63, 0.0 }
 0x1af   :  { %809 = vadd.xlane.f32.xlu0 %v808_v6 }
 0x1bf   :  { %1737 = vrot.lane.b32.xlu1 %v1736_v13, %s1839_s0 }
 0x1c3   :  { %1742 = vrot.lane.b32.xlu1 %v1741_v8, %s1839_s0 }
 0x1c5   :  { %1732 = vrot.lane.b32.xlu0 %v1731_v11, %s1839_s0 }
 0x1c7   :  { %1747 = vrot.lane.b32.xlu1 %v1746_v54, %s1839_s0 }
 0x228   :  { %v792_v9 = vpop.xlane.xlu0 %791 }
 0x229   :  { %1767 = vrcp.f32 %v792_v9 }
 0x22c   :  { %v795_v12 = vpop.xlane.xlu1 %794 }
 0x22d   :  { %v798_v0 = vpop.xlane.xlu0 %797  ;;  %1769 = vrcp.f32 %v795_v12 }
 0x22e   :  { %1771 = vrcp.f32 %v798_v0 }
 0x231   :  { %v801_v58 = vpop.xlane.xlu1 %800 }
 0x232   :  { %1773 = vrcp.f32 %v801_v58 }
 0x233   :  { %v1768_v51 = vpop.eup %1767 }
 0x234   :  { %v822_v53 = vmul.f32 %v1768_v51, %v1752_v27 }
 0x236   :  { %1662 = vmatprep.mubr.msk.f32.mxu1 %vm72_vm0, %v822_v53 }
 0x237   :  { %v807_v56 = vpop.xlane.xlu1 %806 }
 0x238   :  { %v804_v13 = vpop.xlane.xlu0 %803 }
 0x239   :  { %1775 = vrcp.f32 %v804_v13 }
 0x23a   :  { %1777 = vrcp.f32 %v807_v56 }
 0x23b   :  { %v813_v5 = vpop.xlane.xlu1 %812 }
 0x23c   :  { %v810_v7 = vpop.xlane.xlu0 %809 }
 0x23d   :  { %1779 = vrcp.f32 %v810_v7 }
 0x23e   :  { %1781 = vrcp.f32 %v813_v5 }
 0x23f   :  { %v1738_v8 = vpop.permute.xlu1 %1737 }
 0x240   :  { %v1740_v46 = vunpack.i.h.bf16 %v1738_v8  ;;  %v1739_v50 = vunpack.i.l.bf16 %v1738_v8  ;;  %v1733_v11 = vpop.permute.xlu0 %1732 }
 0x241   :  { %v1735_v54 = vunpack.i.h.bf16 %v1733_v11  ;;  %v1734_v15 = vunpack.i.l.bf16 %v1733_v11 }
 0x242   :  { %v864_v17 = vsel %vm72_vm0, %v2197_v44, %v1739_v50  ;;  %v865_v18 = vsel %vm72_vm0, %v2195_v42, %v1740_v46 }
 0x243   :  { %v1743_v19 = vpop.permute.xlu1 %1742  ;;  %v862_v20 = vsel %vm72_vm0, %v2193_v40, %v1734_v15  ;;  %v863_v22 = vsel %vm72_vm0, %v2191_v38, %v1735_v54  ;;  %v1710_v23 = vpack.c.bf16 %v865_v18, %v864_v17  ;;  %v1770_v38 = vpop.eup %1769 }
 0x244   :  { %v1745_v16 = vunpack.i.h.bf16 %v1743_v19  ;;  %v1744_v26 = vunpack.i.l.bf16 %v1743_v19  ;;  %v1706_v29 = vpack.c.bf16 %v863_v22, %v862_v20  ;;  %v1772_v28 = vpop.eup %1771 }
 0x245   :  { %v1774_v25 = vpop.eup %1773  ;;  %v824_v48 = vmul.f32 %v1772_v28, %v2237_v39 }
 0x246   :  { %1707 = vmatprep.subr.bf16.mxu1 %v1706_v29  ;;  %v866_v44 = vsel %vm72_vm0, %v2213_v60, %v1744_v26  ;;  %v867_v42 = vsel %vm72_vm0, %v2211_v57, %v1745_v16  ;;  %v823_v57 = vmul.f32 %v1770_v38, %v2235_v35  ;;  %v1776_v36 = vpop.eup %1775 }
 0x247   :  { %v1748_v4 = vpop.permute.xlu1 %1747  ;;  %1709 = vmatpush3.bf16.msra.mxu1 %v1706_v29  ;;  %v1714_v27 = vpack.c.bf16 %v867_v42, %v866_v44  ;;  %v1778_v37 = vpop.eup %1777 }
 0x248   :  { %v1750_v40 = vunpack.i.h.bf16 %v1748_v4  ;;  %v1749_v31 = vunpack.i.l.bf16 %v1748_v4  ;;  %1711 = vmatprep.subr.bf16.mxu1 %v1710_v23  ;;  %v1780_v49 = vpop.eup %1779  ;;  %v827_v35 = vmul.f32 %v1778_v37, %v2249_v55 }
 0x249   :  { %v1782_v39 = vpop.eup %1781  ;;  %v828_v41 = vmul.f32 %v1780_v49, %v2259_v63 }
 0x24a   :  { %v868_v33 = vsel %vm72_vm0, %v2217_v1, %v1749_v31  ;;  %v869_v34 = vsel %vm72_vm0, %v2215_v62, %v1750_v40  ;;  %v825_v1 = vmul.f32 %v1774_v25, %v2245_v52  ;;  %v826_v62 = vmul.f32 %v1776_v36, %v2251_v14 }
 0x24b   :  { %1713 = vmatpush3.bf16.msra.mxu1 %v1710_v23  ;;  %v1718_v60 = vpack.c.bf16 %v869_v34, %v868_v33  ;;  %v829_v21 = vmul.f32 %v1782_v39, %v2257_v61 }
 0x24c   :  { %1715 = vmatprep.subr.bf16.mxu1 %v1714_v27 }
 0x24e   :  { %1663 = vmatmul.mubr.msk.f32.vlgmr.msra.gmra.mrb[20].mxu1 %vm72_vm0, %v823_v57 }
 0x24f   :  { %1665 = vmatprep.mubr.msk.f32.mxu1 %vm72_vm0, %v824_v48  ;;  %1717 = vmatpush3.bf16.msra.mxu1 %v1714_v27 }
 0x250   :  { %1719 = vmatprep.subr.bf16.mxu1 %v1718_v60 }
 0x252   :  { %1666 = vmatmul.mubr.msk.f32.gmra.mrb[22].mxu1 %vm72_vm0, %v825_v1 }
 0x253   :  { %1721 = vmatpush3.bf16.msra.mxu1 %v1718_v60  ;;  %1676 = vmatprep.mubr.msk.f32.mxu1 %vm72_vm0, %v826_v62 }
 0x256   :  { %1677 = vmatmul.mubr.msk.f32.vlgmr.msra.gmra.mrb[24].mxu1 %vm72_vm0, %v827_v35 }
 0x257   :  { %1679 = vmatprep.mubr.msk.f32.mxu1 %vm72_vm0, %v828_v41 }
 0x25a   :  { %1680 = vmatmul.mubr.msk.f32.gmra.mrb[26].mxu1 %vm72_vm0, %v829_v21 }
 0x321   :  { %v2309_v43 = vpop.f32.mrb[20].mxu1 }
 0x322   :  { %1203 = vrot.lane.b32.xlu1 %v2309_v43, %s1840_s2  ;;  %v2313_v24 = vpop.f32.mrb[21].mxu1  ;;  %v1067_v7 = vsel %vm72_vm0, %v2309_v43, 0.0 }
 0x323   :  { %1201 = vrot.lane.b32.xlu0 %v2313_v24, %s1840_s2  ;;  %v1064_v50 = vsel %vm72_vm0, %v2313_v24, 0.0 }
 0x325   :  { %v2317_v45 = vpop.f32.mrb[22].mxu1 }
 0x326   :  { %1207 = vrot.lane.b32.xlu1 %v2317_v45, %s1840_s2  ;;  %v2321_v47 = vpop.f32.mrb[23].mxu1  ;;  %v1073_v46 = vsel %vm72_vm0, %v2317_v45, 0.0 }
 0x327   :  { %1205 = vrot.lane.b32.xlu0 %v2321_v47, %s1840_s2  ;;  %v1070_v54 = vsel %vm72_vm0, %v2321_v47, 0.0 }
 0x329   :  { %v2325_v52 = vpop.f32.mrb[24].mxu1 }
 0x32a   :  { %1211 = vrot.lane.b32.xlu1 %v2325_v52, %s1840_s2  ;;  %v2329_v32 = vpop.f32.mrb[25].mxu1  ;;  %v1079_v11 = vsel %vm72_vm0, %v2325_v52, 0.0 }
 0x32b   :  { %1209 = vrot.lane.b32.xlu0 %v2329_v32, %s1840_s2  ;;  %v1076_v17 = vsel %vm72_vm0, %v2329_v32, 0.0 }
 0x32d   :  { %v2333_v55 = vpop.f32.mrb[26].mxu1 }
 0x32e   :  { %1215 = vrot.lane.b32.xlu1 %v2333_v55, %s1840_s2  ;;  %v2337_v14 = vpop.f32.mrb[27].mxu1  ;;  %v1085_v15 = vsel %vm72_vm0, %v2333_v55, 0.0 }
 0x32f   :  { %1213 = vrot.lane.b32.xlu0 %v2337_v14, %s1840_s2  ;;  %v1082_v18 = vsel %vm72_vm0, %v2337_v14, 0.0 }
 0x394   :  { %v1204_v30 = vpop.permute.xlu1 %1203 }
 0x395   :  { %v1202_v59 = vpop.permute.xlu0 %1201  ;;  %v1228_v61 = vsel %vm72_vm0, %v1204_v30, 0.0 }
 0x396   :  { %1229 = vadd.xlane.f32.xlu1 %v1228_v61  ;;  %v1225_v63 = vsel %vm72_vm0, %v1202_v59, 0.0 }
 0x397   :  { %1226 = vadd.xlane.f32.xlu0 %v1225_v63 }
 0x398   :  { %v1208_v2 = vpop.permute.xlu1 %1207 }
 0x399   :  { %v1206_v6 = vpop.permute.xlu0 %1205  ;;  %v1234_v9 = vsel %vm72_vm0, %v1208_v2, 0.0 }
 0x39a   :  { %v1231_v0 = vsel %vm72_vm0, %v1206_v6, 0.0 }
 0x39b   :  { %1235 = vadd.xlane.f32.xlu0 %v1234_v9 }
 0x39c   :  { %v1212_v12 = vpop.permute.xlu1 %1211 }
 0x39d   :  { %v1210_v51 = vpop.permute.xlu0 %1209  ;;  %v1240_v58 = vsel %vm72_vm0, %v1212_v12, 0.0 }
 0x39e   :  { %1241 = vadd.xlane.f32.xlu1 %v1240_v58  ;;  %v1237_v13 = vsel %vm72_vm0, %v1210_v51, 0.0 }
 0x39f   :  { %1232 = vadd.xlane.f32.xlu0 %v1231_v0 }
 0x3a0   :  { %v1216_v53 = vpop.permute.xlu1 %1215 }
 0x3a1   :  { %v1246_v56 = vsel %vm72_vm0, %v1216_v53, 0.0  ;;  %v1214_v5 = vpop.permute.xlu0 %1213 }
 0x3a2   :  { %1247 = vadd.xlane.f32.xlu1 %v1246_v56  ;;  %v1243_v8 = vsel %vm72_vm0, %v1214_v5, 0.0 }
 0x3a3   :  { %1238 = vadd.xlane.f32.xlu0 %v1237_v13 }
 0x3a6   :  { %1068 = vadd.xlane.f32.xlu1 %v1067_v7 }
 0x3a7   :  { %1244 = vadd.xlane.f32.xlu0 %v1243_v8 }
 0x3aa   :  { %1074 = vadd.xlane.f32.xlu1 %v1073_v46 }
 0x3ab   :  { %1065 = vadd.xlane.f32.xlu0 %v1064_v50 }
 0x3ae   :  { %1080 = vadd.xlane.f32.xlu1 %v1079_v11 }
 0x3af   :  { %1071 = vadd.xlane.f32.xlu0 %v1070_v54 }
 0x3b2   :  { %1086 = vadd.xlane.f32.xlu1 %v1085_v15 }
 0x3b3   :  { %1077 = vadd.xlane.f32.xlu0 %v1076_v17 }
 0x3b7   :  { %1083 = vadd.xlane.f32.xlu0 %v1082_v18 }
 0x423   :  { %v1230_v19 = vpop.xlane.xlu1 %1229 }
 0x424   :  { %v1250_v20 = vmul.f32 0.03125, %v1230_v19  ;;  %v1227_v22 = vpop.xlane.xlu0 %1226 }
 0x425   :  { %v1249_v23 = vmul.f32 0.03125, %v1227_v22 }
 0x426   :  { %v2366_v16 = vsub.f32 %v2309_v43, %v1250_v20 }
 0x427   :  { %v2369_v26 = vsub.f32 %v2313_v24, %v1249_v23 }
 0x428   :  { %v1236_v29 = vpop.xlane.xlu0 %1235  ;;  %v1266_v44 = vmul.f32 %v2366_v16, %v2366_v16 }
 0x429   :  { %v1252_v42 = vmul.f32 0.03125, %v1236_v29  ;;  %v1265_v4 = vmul.f32 %v2369_v26, %v2369_v26 }
 0x42a   :  { %1283 = vrot.lane.b32.xlu1 %v1266_v44, %s1840_s2 }
 0x42b   :  { %v2377_v27 = vsub.f32 %v2317_v45, %v1252_v42  ;;  %v1242_v40 = vpop.xlane.xlu1 %1241  ;;  %1281 = vrot.lane.b32.xlu0 %v1265_v4, %s1840_s2 }
 0x42c   :  { %v1233_v31 = vpop.xlane.xlu0 %1232  ;;  %v1254_v38 = vmul.f32 0.03125, %v1242_v40 }
 0x42d   :  { %v1251_v28 = vmul.f32 0.03125, %v1233_v31  ;;  %v1268_v33 = vmul.f32 %v2377_v27, %v2377_v27 }
 0x42e   :  { %v2387_v25 = vsub.f32 %v2325_v52, %v1254_v38 }
 0x42f   :  { %v2383_v34 = vsub.f32 %v2321_v47, %v1251_v28  ;;  %v1248_v60 = vpop.xlane.xlu1 %1247  ;;  %1287 = vrot.lane.b32.xlu1 %v1268_v33, %s1840_s2 }
 0x430   :  { %v1239_v57 = vpop.xlane.xlu0 %1238  ;;  %v1256_v48 = vmul.f32 0.03125, %v1248_v60  ;;  %v1270_v39 = vmul.f32 %v2387_v25, %v2387_v25 }
 0x431   :  { %v1253_v36 = vmul.f32 0.03125, %v1239_v57  ;;  %v1267_v1 = vmul.f32 %v2383_v34, %v2383_v34 }
 0x432   :  { %v2396_v49 = vsub.f32 %v2333_v55, %v1256_v48 }
 0x433   :  { %v2392_v37 = vsub.f32 %v2329_v32, %v1253_v36  ;;  %1285 = vrot.lane.b32.xlu1 %v1267_v1, %s1840_s2  ;;  %v1069_v61 = vpop.xlane.xlu1 %1068 }
 0x434   :  { %v1245_v62 = vpop.xlane.xlu0 %1244  ;;  %v1272_v30 = vmul.f32 %v2396_v49, %v2396_v49  ;;  %v1090_v0 = vmul.f32 0.03125, %v1069_v61 }
 0x435   :  { %v1255_v35 = vmul.f32 0.03125, %v1245_v62  ;;  %v1269_v41 = vmul.f32 %v2392_v37, %v2392_v37 }
 0x436   :  { %v2422_v7 = vsub.f32 %v2309_v43, %v1090_v0 }
 0x437   :  { %v2403_v21 = vsub.f32 %v2337_v14, %v1255_v35  ;;  %1291 = vrot.lane.b32.xlu1 %v1270_v39, %s1840_s2  ;;  %1289 = vrot.lane.b32.xlu0 %v1269_v41, %s1840_s2  ;;  %v1075_v2 = vpop.xlane.xlu1 %1074 }
 0x438   :  { %v1066_v63 = vpop.xlane.xlu0 %1065  ;;  %v1092_v56 = vmul.f32 0.03125, %v1075_v2  ;;  %v1106_v43 = vmul.f32 %v2422_v7, %v2422_v7  ;;  %v1183_v2 = vsub.s32 4, %v2092_v3 }
 0x439   :  { %v1271_v59 = vmul.f32 %v2403_v21, %v2403_v21  ;;  %v1089_v6 = vmul.f32 0.03125, %v1066_v63 }
 0x43a   :  { %v2425_v50 = vsub.f32 %v2317_v45, %v1092_v56 }
 0x43b   :  { %1295 = vrot.lane.b32.xlu1 %v1272_v30, %s1840_s2  ;;  %1293 = vrot.lane.b32.xlu0 %v1271_v59, %s1840_s2  ;;  %v2414_v12 = vsub.f32 %v2313_v24, %v1089_v6  ;;  %v1081_v51 = vpop.xlane.xlu1 %1080  ;;  %v2471_v6 = vrot.slane %v2099_v10, %v1183_v2 }
 0x43c   :  { %v1072_v9 = vpop.xlane.xlu0 %1071  ;;  %v1094_v8 = vmul.f32 0.03125, %v1081_v51  ;;  %v1108_v20 = vmul.f32 %v2425_v50, %v2425_v50 }
 0x43d   :  { %v1091_v58 = vmul.f32 0.03125, %v1072_v9  ;;  %v1105_v5 = vmul.f32 %v2414_v12, %v2414_v12  ;;  %v1171_v9 = vsub.s32 3, %v2092_v3 }
 0x43f   :  { %v2417_v13 = vsub.f32 %v2321_v47, %v1091_v58  ;;  %v1087_v46 = vpop.xlane.xlu1 %1086  ;;  %v1113_v11 = vsel %vm72_vm0, %v1105_v5, 0.0  ;;  %v2431_v47 = vsub.f32 %v2325_v52, %v1094_v8  ;;  %v1116_v52 = vsel %vm72_vm0, %v1106_v43, 0.0 }
 0x440   :  { %v1078_v53 = vpop.xlane.xlu0 %1077  ;;  %v1096_v15 = vmul.f32 0.03125, %v1087_v46  ;;  %v2477_v51 = vrot.slane %v2099_v10, %v1171_v9 }
 0x441   :  { %v1093_v24 = vmul.f32 0.03125, %v1078_v53  ;;  %v1107_v54 = vmul.f32 %v2417_v13, %v2417_v13  ;;  %v1110_v23 = vmul.f32 %v2431_v47, %v2431_v47 }
 0x442   :  { %v2442_v22 = vsub.f32 %v2333_v55, %v1096_v15 }
 0x443   :  { %v2436_v18 = vsub.f32 %v2329_v32, %v1093_v24  ;;  %v1119_v19 = vsel %vm72_vm0, %v1107_v54, 0.0  ;;  %v1122_v32 = vsel %vm72_vm0, %v1108_v20, 0.0  ;;  %v1128_v42 = vsel %vm72_vm0, %v1110_v23, 0.0 }
 0x444   :  { %v1084_v17 = vpop.xlane.xlu0 %1083  ;;  %v1112_v55 = vmul.f32 %v2442_v22, %v2442_v22 }
 0x445   :  { %v1095_v45 = vmul.f32 0.03125, %v1084_v17  ;;  %v1109_v44 = vmul.f32 %v2436_v18, %v2436_v18 }
 0x447   :  { %v2448_v29 = vsub.f32 %v2337_v14, %v1095_v45  ;;  %v1125_v4 = vsel %vm72_vm0, %v1109_v44, 0.0  ;;  %v1134_v14 = vsel %vm72_vm0, %v1112_v55, 0.0 }
 0x449   :  { %v1111_v40 = vmul.f32 %v2448_v29, %v2448_v29 }
 0x44b   :  { %v1131_v31 = vsel %vm72_vm0, %v1111_v40, 0.0 }
 0x45a   :  { %1114 = vadd.xlane.f32.xlu0 %v1113_v11 }
 0x45e   :  { %1120 = vadd.xlane.f32.xlu0 %v1119_v19 }
 0x45f   :  { %1117 = vadd.xlane.f32.xlu1 %v1116_v52 }
 0x462   :  { %1123 = vadd.xlane.f32.xlu0 %v1122_v32 }
 0x463   :  { %1129 = vadd.xlane.f32.xlu1 %v1128_v42 }
 0x466   :  { %1126 = vadd.xlane.f32.xlu0 %v1125_v4 }
 0x467   :  { %1135 = vadd.xlane.f32.xlu1 %v1134_v14 }
 0x46a   :  { %1132 = vadd.xlane.f32.xlu0 %v1131_v31 }
 0x49c   :  { %v1284_v38 = vpop.permute.xlu1 %1283 }
 0x49d   :  { %v1282_v28 = vpop.permute.xlu0 %1281  ;;  %v1308_v33 = vsel %vm72_vm0, %v1284_v38, 0.0 }
 0x49e   :  { %1309 = vadd.xlane.f32.xlu1 %v1308_v33  ;;  %v1305_v60 = vsel %vm72_vm0, %v1282_v28, 0.0 }
 0x49f   :  { %1306 = vadd.xlane.f32.xlu0 %v1305_v60 }
 0x4a1   :  { %v1288_v57 = vpop.permute.xlu1 %1287 }
 0x4a2   :  { %v1314_v48 = vsel %vm72_vm0, %v1288_v57, 0.0 }
 0x4a3   :  { %1315 = vadd.xlane.f32.xlu1 %v1314_v48 }
 0x4a5   :  { %v1286_v36 = vpop.permute.xlu1 %1285 }
 0x4a6   :  { %v1311_v1 = vsel %vm72_vm0, %v1286_v36, 0.0 }
 0x4a7   :  { %1312 = vadd.xlane.f32.xlu0 %v1311_v1 }
 0x4a9   :  { %v1292_v62 = vpop.permute.xlu1 %1291  ;;  %v1290_v35 = vpop.permute.xlu0 %1289 }
 0x4aa   :  { %v1320_v39 = vsel %vm72_vm0, %v1292_v62, 0.0  ;;  %v1317_v41 = vsel %vm72_vm0, %v1290_v35, 0.0 }
 0x4ab   :  { %1321 = vadd.xlane.f32.xlu1 %v1320_v39  ;;  %1318 = vadd.xlane.f32.xlu0 %v1317_v41 }
 0x4ad   :  { %v1296_v30 = vpop.permute.xlu1 %1295  ;;  %v1294_v59 = vpop.permute.xlu0 %1293 }
 0x4ae   :  { %v1326_v61 = vsel %vm72_vm0, %v1296_v30, 0.0  ;;  %v1323_v63 = vsel %vm72_vm0, %v1294_v59, 0.0 }
 0x4af   :  { %1327 = vadd.xlane.f32.xlu1 %v1326_v61  ;;  %1324 = vadd.xlane.f32.xlu0 %v1323_v63 }
 0x4c0   :  { %1374 = vrot.lane.b32.xlu1 %v2471_v6, %s1839_s0 }
 0x4c5   :  { %1362 = vrot.lane.b32.xlu0 %v2477_v51, %s1839_s0 }
 0x4e7   :  { %v1115_v58 = vpop.xlane.xlu0 %1114 }
 0x4e8   :  { %v1137_v46 = vmul.f32 0.03125, %v1115_v58 }
 0x4ea   :  { %v1145_v3 = vadd.f32 1e-05, %v1137_v46 }
 0x4eb   :  { %v1121_v0 = vpop.xlane.xlu0 %1120 }
 0x4ec   :  { %v1118_v53 = vpop.xlane.xlu1 %1117  ;;  %v1139_v15 = vmul.f32 0.03125, %v1121_v0  ;;  %1783 = vrsqrt.f32 %v1145_v3 }
 0x4ed   :  { %v1138_v24 = vmul.f32 0.03125, %v1118_v53 }
 0x4ee   :  { %v1147_v19 = vadd.f32 1e-05, %v1139_v15 }
 0x4ef   :  { %v1124_v56 = vpop.xlane.xlu0 %1123  ;;  %v1146_v43 = vadd.f32 1e-05, %v1138_v24 }
 0x4f0   :  { %v1130_v5 = vpop.xlane.xlu1 %1129  ;;  %v1140_v11 = vmul.f32 0.03125, %v1124_v56 }
 0x4f1   :  { %1785 = vrsqrt.f32 %v1146_v43  ;;  %v1142_v44 = vmul.f32 0.03125, %v1130_v5 }
 0x4f2   :  { %v1148_v45 = vadd.f32 1e-05, %v1140_v11 }
 0x4f3   :  { %v1127_v8 = vpop.xlane.xlu0 %1126  ;;  %v1150_v14 = vadd.f32 1e-05, %v1142_v44 }
 0x4f4   :  { %v1136_v54 = vpop.xlane.xlu1 %1135  ;;  %1787 = vrsqrt.f32 %v1148_v45  ;;  %v1141_v55 = vmul.f32 0.03125, %v1127_v8 }
 0x4f5   :  { %1789 = vrsqrt.f32 %v1147_v19  ;;  %v1144_v31 = vmul.f32 0.03125, %v1136_v54 }
 0x4f6   :  { %v1149_v28 = vadd.f32 1e-05, %v1141_v55  ;;  %v1784_v48 = vpop.eup %1783 }
 0x4f7   :  { %v1133_v17 = vpop.xlane.xlu0 %1132  ;;  %v1152_v1 = vadd.f32 1e-05, %v1144_v31  ;;  %v1161_v2 = vmul.f32 %v1784_v48, %v2414_v12 }
 0x4f8   :  { %v1143_v33 = vmul.f32 0.03125, %v1133_v17 }
 0x4f9   :  { %v1173_v54 = vmul.f32 %v2477_v51, %v1161_v2 }
 0x4fa   :  { %v1151_v35 = vadd.f32 1e-05, %v1143_v33 }
 0x4fb   :  { %v1786_v36 = vpop.eup %1785  ;;  %v1185_v44 = vadd.f32 %v2471_v6, %v1173_v54 }
 0x4fc   :  { %v1162_v9 = vmul.f32 %v1786_v36, %v2422_v7 }
 0x4fe   :  { %v1788_v30 = vpop.eup %1787  ;;  %v1174_v12 = vmul.f32 %v2477_v51, %v1162_v9 }
 0x4ff   :  { %v1790_v63 = vpop.eup %1789  ;;  %v1164_v5 = vmul.f32 %v1788_v30, %v2425_v50 }
 0x500   :  { %v1163_v3 = vmul.f32 %v1790_v63, %v2417_v13  ;;  %v1186_v55 = vadd.f32 %v2471_v6, %v1174_v12 }
 0x501   :  { %v1176_v45 = vmul.f32 %v2477_v51, %v1164_v5 }
 0x52b   :  { %v1310_v10 = vpop.xlane.xlu1 %1309 }
 0x52c   :  { %v1330_v20 = vmul.f32 0.03125, %v1310_v10  ;;  %v1307_v52 = vpop.xlane.xlu0 %1306 }
 0x52d   :  { %v1329_v23 = vmul.f32 0.03125, %v1307_v52 }
 0x52e   :  { %v1338_v32 = vadd.f32 1e-05, %v1330_v20 }
 0x52f   :  { %v1337_v42 = vadd.f32 1e-05, %v1329_v23 }
 0x530   :  { %v1316_v4 = vpop.xlane.xlu1 %1315  ;;  %1791 = vrsqrt.f32 %v1338_v32 }
 0x531   :  { %v1332_v40 = vmul.f32 0.03125, %v1316_v4  ;;  %1793 = vrsqrt.f32 %v1337_v42  ;;  %v1175_v42 = vmul.f32 %v2477_v51, %v1163_v3 }
 0x533   :  { %v1340_v38 = vadd.f32 1e-05, %v1332_v40  ;;  %v1188_v40 = vadd.f32 %v2471_v6, %v1176_v45 }
 0x534   :  { %v1313_v60 = vpop.xlane.xlu0 %1312 }
 0x535   :  { %1795 = vrsqrt.f32 %v1340_v38  ;;  %v1331_v57 = vmul.f32 0.03125, %v1313_v60 }
 0x536   :  { %1797 = vrsqrt.f32 %v1150_v14 }
 0x537   :  { %v1339_v62 = vadd.f32 1e-05, %v1331_v57  ;;  %1799 = vrsqrt.f32 %v1149_v28 }
 0x538   :  { %v1322_v39 = vpop.xlane.xlu1 %1321  ;;  %v1319_v41 = vpop.xlane.xlu0 %1318 }
 0x539   :  { %1801 = vrsqrt.f32 %v1339_v62  ;;  %v1334_v59 = vmul.f32 0.03125, %v1322_v39  ;;  %v1333_v61 = vmul.f32 0.03125, %v1319_v41 }
 0x53a   :  { %v1792_v58 = vpop.eup %1791  ;;  %1803 = vrsqrt.f32 %v1152_v1 }
 0x53b   :  { %v1342_v0 = vadd.f32 1e-05, %v1334_v59  ;;  %v1341_v53 = vadd.f32 1e-05, %v1333_v61  ;;  %v1794_v56 = vpop.eup %1793  ;;  %1805 = vrsqrt.f32 %v1151_v35  ;;  %v1354_v15 = vmul.f32 %v1792_v58, %v2366_v16 }
 0x53c   :  { %v1328_v8 = vpop.xlane.xlu1 %1327  ;;  %v1325_v46 = vpop.xlane.xlu0 %1324  ;;  %v1353_v17 = vmul.f32 %v1794_v56, %v2369_v26 }
 0x53d   :  { %1807 = vrsqrt.f32 %v1342_v0  ;;  %v1336_v24 = vmul.f32 0.03125, %v1328_v8  ;;  %v1335_v11 = vmul.f32 0.03125, %v1325_v46 }
 0x53e   :  { %1809 = vrsqrt.f32 %v1341_v53 }
 0x53f   :  { %v1796_v7 = vpop.eup %1795  ;;  %v1344_v43 = vadd.f32 1e-05, %v1336_v24  ;;  %v1343_v50 = vadd.f32 1e-05, %v1335_v11 }
 0x540   :  { %v1356_v10 = vmul.f32 %v1796_v7, %v2377_v27  ;;  %v1363_v19 = vpop.permute.xlu0 %1362  ;;  %v2491_v20 = vpop.permute.xlu1 %1374 }
 0x541   :  { %v1798_v52 = vpop.eup %1797  ;;  %1811 = vrsqrt.f32 %v1344_v43  ;;  %v1365_v13 = vmul.f32 %v1363_v19, %v1353_v17  ;;  %v1366_v23 = vmul.f32 %v1363_v19, %v1354_v15 }
 0x542   :  { %v1800_v32 = vpop.eup %1799  ;;  %1813 = vrsqrt.f32 %v1343_v50  ;;  %v1368_v16 = vmul.f32 %v1363_v19, %v1356_v10  ;;  %v1166_v14 = vmul.f32 %v1798_v52, %v2431_v47 }
 0x543   :  { %v1802_v26 = vpop.eup %1801  ;;  %v1377_v27 = vadd.f32 %v2491_v20, %v1365_v13  ;;  %v1378_v4 = vadd.f32 %v2491_v20, %v1366_v23  ;;  %v1165_v33 = vmul.f32 %v1800_v32, %v2436_v18 }
 0x544   :  { %v1355_v31 = vmul.f32 %v1802_v26, %v2383_v34  ;;  %v1380_v38 = vadd.f32 %v2491_v20, %v1368_v16  ;;  %v1804_v28 = vpop.eup %1803  ;;  %v1187_v34 = vadd.f32 %v2471_v6, %v1175_v42  ;;  %v1178_v18 = vmul.f32 %v2477_v51, %v1166_v14 }
 0x545   :  { %v1385_v60 = vsel %vm72_vm0, %v1185_v44, %v1377_v27  ;;  %v1386_v57 = vsel %vm72_vm0, %v1186_v55, %v1378_v4  ;;  %v1806_v48 = vpop.eup %1805  ;;  %v1168_v35 = vmul.f32 %v1804_v28, %v2442_v22  ;;  %v1177_v30 = vmul.f32 %v2477_v51, %v1165_v33 }
 0x546   :  { %v1367_v36 = vmul.f32 %v1363_v19, %v1355_v31  ;;  %v1388_v1 = vsel %vm72_vm0, %v1188_v40, %v1380_v38  ;;  %1394 = vst.msk [vmem:[#allocation2] sm:$0xff] %vm1393_vm1, %v1385_v60  ;;  %1395 = vst.msk [vmem:[#allocation2 + $0x8] sm:$0xff] %vm1393_vm1, %v1386_v57  ;;  %v1167_v59 = vmul.f32 %v1806_v48, %v2448_v29 }
 0x547   :  { %v1808_v47 = vpop.eup %1807  ;;  %1397 = vst.msk [vmem:[#allocation2 + $0x18] sm:$0xff] %vm1393_vm1, %v1388_v1  ;;  %v1190_v22 = vadd.f32 %v2471_v6, %v1178_v18  ;;  %v1189_v29 = vadd.f32 %v2471_v6, %v1177_v30 }
 0x548   :  { %v1810_v62 = vpop.eup %1809  ;;  %v1358_v39 = vmul.f32 %v1808_v47, %v2387_v25  ;;  %v1379_v41 = vadd.f32 %v2491_v20, %v1367_v36  ;;  %v1180_v25 = vmul.f32 %v2477_v51, %v1168_v35 }
 0x549   :  { %v1357_v61 = vmul.f32 %v1810_v62, %v2392_v37  ;;  %v1179_v37 = vmul.f32 %v2477_v51, %v1167_v59 }
 0x54a   :  { %v1370_v63 = vmul.f32 %v1363_v19, %v1358_v39  ;;  %v1387_v2 = vsel %vm72_vm0, %v1187_v34, %v1379_v41 }
 0x54b   :  { %v1812_v9 = vpop.eup %1811  ;;  %v1369_v58 = vmul.f32 %v1363_v19, %v1357_v61  ;;  %1396 = vst.msk [vmem:[#allocation2 + $0x10] sm:$0xff] %vm1393_vm1, %v1387_v2 }
 0x54c   :  { %v1814_v0 = vpop.eup %1813  ;;  %v1360_v53 = vmul.f32 %v1812_v9, %v2396_v49  ;;  %v1382_v56 = vadd.f32 %v2491_v20, %v1370_v63  ;;  %v1192_v49 = vadd.f32 %v2471_v6, %v1180_v25 }
 0x54d   :  { %v1359_v5 = vmul.f32 %v1814_v0, %v2403_v21  ;;  %v1381_v8 = vadd.f32 %v2491_v20, %v1369_v58  ;;  %v1191_v21 = vadd.f32 %v2471_v6, %v1179_v37 }
 0x54e   :  { %v1372_v46 = vmul.f32 %v1363_v19, %v1360_v53  ;;  %v1390_v24 = vsel %vm72_vm0, %v1190_v22, %v1382_v56 }
 0x54f   :  { %v1371_v11 = vmul.f32 %v1363_v19, %v1359_v5  ;;  %v1389_v54 = vsel %vm72_vm0, %v1189_v29, %v1381_v8  ;;  %1399 = vst.msk [vmem:[#allocation2 + $0x28] sm:$0xff] %vm1393_vm1, %v1390_v24 }
 0x550   :  { %v1384_v3 = vadd.f32 %v2491_v20, %v1372_v46  ;;  %1398 = vst.msk [vmem:[#allocation2 + $0x20] sm:$0xff] %vm1393_vm1, %v1389_v54 }
 0x551   :  { %v1383_v51 = vadd.f32 %v2491_v20, %v1371_v11 }
 0x552   :  { %v1392_v12 = vsel %vm72_vm0, %v1192_v49, %v1384_v3 }
 0x553   :  { %v1391_v7 = vsel %vm72_vm0, %v1191_v21, %v1383_v51  ;;  %1401 = vst.msk [vmem:[#allocation2 + $0x38] sm:$0xff] %vm1393_vm1, %v1392_v12 }
 0x554   :  { %1400 = vst.msk [vmem:[#allocation2 + $0x30] sm:$0xff] %vm1393_vm1, %v1391_v7 }
 0x555   :  { %1826 = shalt.err (!%p1823_p4)
}
 0x556   :  { %s1827_s28 = scalar_lea.hbm %s2554_s3, 1024 }
 0x557   :  { %p1828_p5 = scmp.ne.s32.totalorder %s2554_s3, %s1827_s28  ;;  %p1831_p6 = scmp.lt.u32.totalorder %s1827_s28, %s2554_s3 }
 0x559   :  { %p1833_p7 = pnand %p1831_p6, %p1828_p5 }
 0x55b   :  { %1836 = shalt.err (!%p1833_p7)
}
 0x55c   :  { %s1842_s6 = smov 128   ;;  %s1843_s1 = smov 8  }
 0x55d   :  { %1413 = dma.vmem_to_hbm [thread:$0]  %s1408_s24, 1024, %s2554_s3, [#allocation3], %s1842_s6, %s1842_s6, %s1843_s1  }
 0x55e   :  { %1837 = dma.done.wait [#allocation3], 1024  }
 0x55f   :  { %1838 = vsyncadd [#allocation3], 4294966272 }
 0x560   :  { %1417 = vsyncpa [#allocation3], 1 }

</bundles_post_ra>
